<compile_context>
chip_gen: v7x
topology: tpu7x:2x2x1
jax: 0.10.0
libtpu: 0.0.40
codegen_flags: <defaults>
</compile_context>

<pallas_src>
import numpy as np
import jax
import jax.numpy as jnp
from jax.experimental import pallas as pl
from jax.experimental.pallas import tpu as pltpu

NEG_SLOPE = 0.01  # F.leaky_relu default negative_slope


# --------------------------- conv-stack geometry -----------------------------
def _conv_geometry(H, W, input_size, num_filters, num_convs):
    """Stage descriptors mirroring ConvMLPNetwork's conv stack."""
    stages = []
    h, w, cin = H, W, input_size

    def add(K, P, cout, act):
        nonlocal h, w, cin
        st = dict(K=K, P=P, Cin=cin, Cout=cout, Hin=h, Win=w,
                  Hp=h + 2 * P, Wp=w + 2 * P, act=act)
        st['Ho'] = st['Hp'] - K + 1
        st['Wo'] = st['Wp'] - K + 1
        stages.append(st)
        h, w, cin = st['Ho'], st['Wo'], cout

    add(5, 2, num_filters, act=False)                 # conv_initial, no act
    for _ in range(num_convs - 2):                    # middle: k=3 but pad=2 (module bug)
        add(3, 2, num_filters, act=True)              # leaky_relu
    add(3, 0, num_filters, act=False)                 # conv_final 'valid', no act
    return stages, (h, w)


# --------------------------- offline weight packing ---------------------------
def _expand_conv_weight(w_hwio, Wp, Wo, dtype=np.float32):
    """HWIO (KH,KW,Cin,Cout) -> row-Toeplitz (KH, Wp*Cin, Wo*Cout).

    E[kh][(w)*Cin+ci, (wo)*Cout+co] = W[kh, w-wo, ci, co] (0 elsewhere), so
      out[(n,ho),(wo,co)] = sum_kh pad_row[n,ho+kh,:] @ E[kh]
    is exactly the cross-correlation PyTorch Conv2d computes.
    """
    w_np = np.asarray(w_hwio, dtype)
    KH, KW, Cin, Cout = w_np.shape
    E = np.zeros((KH, Wp * Cin, Wo * Cout), dtype)
    for kh in range(KH):
        for wo in range(Wo):
            for kw in range(KW):
                col = wo + kw
                E[kh, col * Cin:(col + 1) * Cin,
                  wo * Cout:(wo + 1) * Cout] = w_np[kh, kw]
    return E


def _chw_to_hwc_perm(C, H, W):
    """perm[(h*W+w)*C + c] = c*H*W + h*W + w  (fold NCHW flatten into weight rows)."""
    perm = np.zeros(C * H * W, np.int32)
    for h in range(H):
        for w in range(W):
            for c in range(C):
                perm[(h * W + w) * C + c] = c * H * W + h * W + w
    return perm


def pack_params(params, stages):
    """Offline (free) packing of raw PyTorch-layout params for the fused kernel.

    - Stages 0..n-2 get row-Toeplitz conv weights + Wo-replicated biases.
    - The last conv (conv_final) + NCHW flatten + linear_initial are composed
      into ONE affine map applied directly to the last stage's input rows:
        h0[n,s] = b_fused[s] + sum_r in[n,r,:] @ F[r]
      with F[r] = sum_{kh+ho=r} E_final[kh] @ W0_perm[ho-block], laid out as a
      single (Wp*Cin, Hp*SH) matrix Fcat (so the kernel needs ONE matmul).
    """
    n_toe = len(stages) - 1
    convs_raw = [params['conv_initial']] + list(params['conv_layers']) + [params['conv_final']]

    conv_E, conv_rb = [], []
    for (w, b), st in zip(convs_raw[:n_toe], stages[:n_toe]):
        conv_E.append(jnp.asarray(_expand_conv_weight(w, st['Wp'], st['Wo'])))
        # bias replicated along wo so it adds directly onto the (Ho, Wo*Cout) rows
        conv_rb.append(jnp.asarray(np.tile(np.asarray(b, np.float32), st['Wo'])[None, :]))

    # ---- fused conv_final + flatten + linear_initial (composed in float64) ----
    stf = stages[-1]
    wfc, bfc = convs_raw[-1]
    Hf, Wf, Cf = stf['Ho'], stf['Wo'], stf['Cout']
    WoC = Wf * Cf
    Hp2 = stf['Hp']
    MP = stf['Wp'] * stf['Cin']

    w0, b0 = params['lin_initial']                 # rows in PyTorch C*H*W flatten order
    SH = int(np.asarray(w0).shape[1])
    perm = _chw_to_hwc_perm(Cf, Hf, Wf)
    W0p = np.asarray(w0, np.float64)[perm, :]      # rows now in H*W*C order, (Hf*Wf*Cf, SH)
    E2 = _expand_conv_weight(wfc, stf['Wp'], stf['Wo'], np.float64)   # (K, MP, WoC)

    Fcat = np.zeros((MP, Hp2 * SH), np.float64)
    for r in range(Hp2):
        Fr = np.zeros((MP, SH), np.float64)
        for kh in range(stf['K']):
            ho = r - kh
            if 0 <= ho < Hf:
                Fr += E2[kh] @ W0p[ho * WoC:(ho + 1) * WoC, :]
        Fcat[:, r * SH:(r + 1) * SH] = Fr
    b_fused = np.asarray(b0, np.float64) + np.tile(np.asarray(bfc, np.float64), Hf * Wf) @ W0p

    lin_w, lin_b = [], []
    for w, b in params['lin_layers']:
        lin_w.append(jnp.asarray(w, jnp.float32))
        lin_b.append(jnp.asarray(np.asarray(b, np.float32)[None, :]))
    wl, bl = params['lin_final']
    lin_w.append(jnp.asarray(wl, jnp.float32))
    lin_b.append(jnp.asarray(np.asarray(bl, np.float32)[None, :]))

    return {'conv_E': conv_E, 'conv_rb': conv_rb,
            'fcat': jnp.asarray(Fcat, jnp.float32),
            'b_fused': jnp.asarray(b_fused[None, :], jnp.float32),
            'lin_w': lin_w, 'lin_b': lin_b}


# ------------------------------ fused kernel ----------------------------------
def _make_kernel(stages, N, num_hidden, SH):
    n_toe = len(stages) - 1          # stages computed with row-Toeplitz matmuls
    Hp2 = stages[-1]['Hp']           # rows per image feeding the fused head

    def kernel(*args):
        it = iter(args)
        x_ref = next(it)
        conv_refs = [(next(it), next(it)) for _ in range(n_toe)]
        fcat_ref = next(it)
        bfused_ref = next(it)
        lin = [(next(it), next(it)) for _ in range(num_hidden + 1)]
        o_ref = next(it)
        pads = [next(it) for _ in range(n_toe)]

        # ---- zero halos once per padded scratch ----
        for p, st in zip(pads, stages[:n_toe]):
            if st['P'] > 0:
                p[...] = jnp.zeros_like(p)

        # ---- copy input interior (rows=(n,h), cols=(w,c)) ----
        st0 = stages[0]
        Hp0, P0, Hin0, Win0, Cin0 = st0['Hp'], st0['P'], st0['Hin'], st0['Win'], st0['Cin']
        for n in range(N):
            pads[0][n * Hp0 + P0: n * Hp0 + P0 + Hin0,
                    P0 * Cin0: (P0 + Win0) * Cin0] = x_ref[n * Hin0:(n + 1) * Hin0, :]

        # ---- conv stack: one fat MXU matmul per tap (all images batched) ----
        last_accs = None
        for si in range(n_toe):
            st = stages[si]
            E_ref, rb_ref = conv_refs[si]
            src = pads[si]
            Hp, KH, Ho = st['Hp'], st['K'], st['Ho']
            WoC = st['Wo'] * st['Cout']
            # K/N dims here are < 128 lanes: accepted (latency-bound, not MXU-bound).
            Y = [jnp.dot(src[...], E_ref[kh], preferred_element_type=jnp.float32)
                 for kh in range(KH)]                       # each (N*Hp, WoC)
            accs = []
            for n in range(N):
                # bias-initialized accumulator: first tap + bias, no zeros pass
                acc = Y[0][n * Hp: n * Hp + Ho, :] + rb_ref[...]
                for kh in range(1, KH):
                    acc = acc + Y[kh][n * Hp + kh: n * Hp + kh + Ho, :]
                if st['act']:
                    acc = jnp.where(acc >= 0.0, acc, NEG_SLOPE * acc)   # leaky_relu
                accs.append(acc)
            if si + 1 < n_toe:
                nxt = stages[si + 1]
                dst = pads[si + 1]
                Pn, Cn, Hpn = nxt['P'], nxt['Cin'], nxt['Hp']
                for n in range(N):
                    dst[n * Hpn + Pn: n * Hpn + Pn + Ho,
                        Pn * Cn: Pn * Cn + WoC] = accs[n]
            else:
                last_accs = accs      # fed straight into the fused head, no scratch

        # ---- fused conv_final + NCHW flatten + linear_initial: ONE matmul ----
        a_all = jnp.concatenate(last_accs, axis=0) if N > 1 else last_accs[0]  # (N*Hp2, MP)
        Yh = jnp.dot(a_all, fcat_ref[...], preferred_element_type=jnp.float32)  # (N*Hp2, Hp2*SH)
        h_rows = []
        for n in range(N):
            hn = bfused_ref[...]                                 # (1, SH) fused bias
            for r in range(Hp2):                                 # diagonal window sum
                hn = hn + Yh[n * Hp2 + r: n * Hp2 + r + 1, r * SH:(r + 1) * SH]
            h_rows.append(hn)
        h = jnp.concatenate(h_rows, axis=0) if N > 1 else h_rows[0]   # (N, SH)

        # ---- hidden linears (leaky_relu) + final linear ----
        for li, (w_ref, b_ref) in enumerate(lin):
            h = jnp.dot(h, w_ref[...], preferred_element_type=jnp.float32) + b_ref[...]
            if li < num_hidden:
                h = jnp.where(h >= 0.0, h, NEG_SLOPE * h)

        # softmax over last dim; EUP reciprocal + one Newton step keeps f32 accuracy
        h = h - jnp.max(h, axis=-1, keepdims=True)
        e = jnp.exp(h)
        s = jnp.sum(e, axis=-1, keepdims=True)
        r = pl.reciprocal(s, approx=True)
        r = r * (2.0 - s * r)
        o_ref[...] = e * r

    return kernel


def build_forward(hparams, input_size, output_size):
    H, W = hparams['OBS_STATE_SHAPE']
    nf = hparams['NUM_FILTERS']
    nc = hparams['NUM_CONV_LAYERS']
    nh = hparams['NUM_HIDDEN_LAYERS']
    sh = hparams['SIZE_HIDDEN_LAYERS']
    stages, (Hf, Wf) = _conv_geometry(H, W, input_size, nf, nc)
    assert Hf * Wf * nf == H * W * nf, (
        "flattened conv output must equal linear_initial's input size "
        "(requires NUM_CONV_LAYERS == 3, exactly as in the PyTorch module)")
    assert stages[-1]['P'] == 0, "conv_final must be 'valid' for the head fusion"
    n_toe = len(stages) - 1

    def forward(x_nchw, packed):
        N, Cin, Hx, Wx = x_nchw.shape
        # single boundary layout op: NCHW -> 2-D (N*H, W*Cin); rows=(n,h), cols=(w,c)
        x2d = jnp.transpose(x_nchw, (0, 2, 3, 1)).reshape(N * Hx, Wx * Cin)

        inputs = [x2d]
        for E, rb in zip(packed['conv_E'], packed['conv_rb']):
            inputs += [E, rb]
        inputs += [packed['fcat'], packed['b_fused']]
        for w, b in zip(packed['lin_w'], packed['lin_b']):
            inputs += [w, b]
        out_dim = packed['lin_w'][-1].shape[1]

        scratch = [pltpu.VMEM((N * st['Hp'], st['Wp'] * st['Cin']), jnp.float32)
                   for st in stages[:n_toe]]

        return pl.pallas_call(
            _make_kernel(stages, N, nh, sh),
            out_shape=jax.ShapeDtypeStruct((N, out_dim), jnp.float32),
            in_specs=[pl.BlockSpec(memory_space=pltpu.MemorySpace.VMEM)
                      for _ in inputs],
            out_specs=pl.BlockSpec(memory_space=pltpu.MemorySpace.VMEM),
            scratch_shapes=scratch,
        )(*inputs)

    return stages, (Hf, Wf), jax.jit(forward)


# ------------------------------ raw parameters --------------------------------
def init_params(key, input_size, output_size, hp):
    """Random params in (conceptual) PyTorch layout: conv HWIO, linear (din,dout),
    lin_initial rows in the PyTorch C*H*W flatten order."""
    nh = hp['NUM_HIDDEN_LAYERS']
    sh = hp['SIZE_HIDDEN_LAYERS']
    nf = hp['NUM_FILTERS']
    nc = hp['NUM_CONV_LAYERS']
    H, W = hp['OBS_STATE_SHAPE']
    keys = iter(jax.random.split(key, 64))

    def conv_wb(kh, kw, cin, cout):
        return (0.1 * jax.random.normal(next(keys), (kh, kw, cin, cout), jnp.float32),
                0.1 * jax.random.normal(next(keys), (cout,), jnp.float32))

    def lin_wb(din, dout):
        return (0.1 * jax.random.normal(next(keys), (din, dout), jnp.float32),
                0.1 * jax.random.normal(next(keys), (dout,), jnp.float32))

    return dict(
        conv_initial=conv_wb(5, 5, input_size, nf),
        conv_layers=[conv_wb(3, 3, nf, nf) for _ in range(nc - 2)],
        conv_final=conv_wb(3, 3, nf, nf),
        lin_initial=lin_wb(H * W * nf, sh),
        lin_layers=[lin_wb(sh, sh) for _ in range(nh)],
        lin_final=lin_wb(sh, output_size),
    )


# --------------------------- pure-JAX reference --------------------------------
def reference_forward(x_nchw, params):
    """XLA reference mirroring the PyTorch module (used as a correctness check)."""
    hi = jax.lax.Precision.HIGHEST

    def conv(x, w_hwio, b, pad):
        y = jax.lax.conv_general_dilated(
            x, w_hwio, window_strides=(1, 1),
            padding=[(pad, pad), (pad, pad)],
            dimension_numbers=('NCHW', 'HWIO', 'NCHW'), precision=hi)
        return y + b.reshape(1, -1, 1, 1)

    w, b = params['conv_initial']
    x = conv(x_nchw, w, b, 2)                                    # no activation
    for w, b in params['conv_layers']:
        x = jax.nn.leaky_relu(conv(x, w, b, 2), NEG_SLOPE)
    w, b = params['conv_final']
    x = conv(x, w, b, 0)                                         # no activation
    x = x.reshape(x.shape[0], -1)                                # PyTorch view(B,-1)
    w, b = params['lin_initial']
    x = jnp.dot(x, w, precision=hi) + b                          # no activation
    for w, b in params['lin_layers']:
        x = jax.nn.leaky_relu(jnp.dot(x, w, precision=hi) + b, NEG_SLOPE)
    w, b = params['lin_final']
    return jax.nn.softmax(jnp.dot(x, w, precision=hi) + b, axis=-1)


# ----------------------------------- main --------------------------------------
if __name__ == "__main__":
    hparams = {
        'NUM_HIDDEN_LAYERS': 2,
        'SIZE_HIDDEN_LAYERS': 32,
        'NUM_FILTERS': 8,
        'NUM_CONV_LAYERS': 3,          # must be 3 for the flatten size to match
        'OBS_STATE_SHAPE': (8, 8),
    }
    input_size, output_size = 4, 6

    key = jax.random.PRNGKey(0)
    key, xkey = jax.random.split(key)
    # input in PyTorch NCHW convention: (batch, channels, H, W)
    x = jax.random.normal(xkey, (2, input_size, 8, 8), dtype=jnp.float32)

    params = init_params(key, input_size, output_size, hparams)
    stages, final_hw, forward = build_forward(hparams, input_size, output_size)
    packed = pack_params(params, stages)

    out = jax.block_until_ready(forward(x, packed))

    assert out.shape == (2, output_size), out.shape
    assert bool(jnp.allclose(jnp.sum(out, axis=-1), 1.0, atol=1e-5)), \
        "softmax rows must sum to 1"

    ref = reference_forward(x, params)
    assert bool(jnp.allclose(out, ref, atol=1e-3, rtol=1e-2)), \
        f"fused kernel mismatch vs reference:\n{out}\n{ref}"

    print("KERNEL_OK")
</pallas_src>

<mosaic_0001>
module attributes {stable_mosaic.version = 11 : i64} {
  func.func @kernel(%arg0: memref<16x32xf32, #tpu.memory_space<vmem>>, %arg1: memref<5x48x64xf32, #tpu.memory_space<vmem>>, %arg2: memref<1x64xf32, #tpu.memory_space<vmem>>, %arg3: memref<3x96x80xf32, #tpu.memory_space<vmem>>, %arg4: memref<1x80xf32, #tpu.memory_space<vmem>>, %arg5: memref<80x320xf32, #tpu.memory_space<vmem>>, %arg6: memref<1x32xf32, #tpu.memory_space<vmem>>, %arg7: memref<32x32xf32, #tpu.memory_space<vmem>>, %arg8: memref<1x32xf32, #tpu.memory_space<vmem>>, %arg9: memref<32x32xf32, #tpu.memory_space<vmem>>, %arg10: memref<1x32xf32, #tpu.memory_space<vmem>>, %arg11: memref<32x6xf32, #tpu.memory_space<vmem>>, %arg12: memref<1x6xf32, #tpu.memory_space<vmem>>, %arg13: memref<2x6xf32, #tpu.memory_space<vmem>>, %arg14: memref<24x48xf32, #tpu.memory_space<vmem>>, %arg15: memref<24x96xf32, #tpu.memory_space<vmem>>) attributes {dimension_semantics = [], scalar_prefetch = 0 : i64, scratch_operands = 2 : i64, tpu.core_type = #tpu.core_type<tc>} {
    %cst = arith.constant 0.000000e+00 : f32
    %0 = vector.broadcast %cst : f32 to vector<24x48xf32>
    %c0 = arith.constant 0 : index
    %c0_0 = arith.constant 0 : index
    %1 = vector.load %arg14[%c0, %c0_0] : memref<24x48xf32, #tpu.memory_space<vmem>>, vector<24x48xf32>
    tpu.vector_store %arg14[%c0, %c0_0], %0 {strides = array<i32>} : memref<24x48xf32, #tpu.memory_space<vmem>>, vector<24x48xf32>,
    %cst_1 = arith.constant 0.000000e+00 : f32
    %2 = vector.broadcast %cst_1 : f32 to vector<24x96xf32>
    %c0_2 = arith.constant 0 : index
    %c0_3 = arith.constant 0 : index
    %3 = vector.load %arg15[%c0_2, %c0_3] : memref<24x96xf32, #tpu.memory_space<vmem>>, vector<24x96xf32>
    tpu.vector_store %arg15[%c0_2, %c0_3], %2 {strides = array<i32>} : memref<24x96xf32, #tpu.memory_space<vmem>>, vector<24x96xf32>,
    %c0_4 = arith.constant 0 : index
    %c0_5 = arith.constant 0 : index
    %4 = vector.load %arg0[%c0_4, %c0_5] : memref<16x32xf32, #tpu.memory_space<vmem>>, vector<8x32xf32>
    %c2 = arith.constant 2 : index
    %c8 = arith.constant 8 : index
    %5 = vector.load %arg14[%c2, %c8] : memref<24x48xf32, #tpu.memory_space<vmem>>, vector<8x32xf32>
    tpu.vector_store %arg14[%c2, %c8], %4 {strides = array<i32>} : memref<24x48xf32, #tpu.memory_space<vmem>>, vector<8x32xf32>,
    %c8_6 = arith.constant 8 : index
    %c0_7 = arith.constant 0 : index
    %6 = vector.load %arg0[%c8_6, %c0_7] : memref<16x32xf32, #tpu.memory_space<vmem>>, vector<8x32xf32>
    %c14 = arith.constant 14 : index
    %c8_8 = arith.constant 8 : index
    %7 = vector.load %arg14[%c14, %c8_8] : memref<24x48xf32, #tpu.memory_space<vmem>>, vector<8x32xf32>
    tpu.vector_store %arg14[%c14, %c8_8], %6 {strides = array<i32>} : memref<24x48xf32, #tpu.memory_space<vmem>>, vector<8x32xf32>,
    %c0_9 = arith.constant 0 : index
    %c0_10 = arith.constant 0 : index
    %8 = vector.load %arg14[%c0_9, %c0_10] : memref<24x48xf32, #tpu.memory_space<vmem>>, vector<24x48xf32>
    %c0_11 = arith.constant 0 : index
    %c0_12 = arith.constant 0 : index
    %c0_13 = arith.constant 0 : index
    %9 = vector.load %arg1[%c0_11, %c0_12, %c0_13] : memref<5x48x64xf32, #tpu.memory_space<vmem>>, vector<1x48x64xf32>
    %10 = vector.shape_cast %9 : vector<1x48x64xf32> to vector<48x64xf32>
    %cst_14 = arith.constant dense<0.000000e+00> : vector<24x64xf32>
    %11 = tpu.matmul %8, %10, %cst_14 {dimension_numbers = #tpu.dot_dimension_numbers<[1], [0], [0], [1], [0, 0, 1, 1], [], []>} : vector<24x48xf32>, vector<48x64xf32>, vector<24x64xf32> -> vector<24x64xf32>
    %c0_15 = arith.constant 0 : index
    %c0_16 = arith.constant 0 : index
    %12 = vector.load %arg14[%c0_15, %c0_16] : memref<24x48xf32, #tpu.memory_space<vmem>>, vector<24x48xf32>
    %c1 = arith.constant 1 : index
    %c0_17 = arith.constant 0 : index
    %c0_18 = arith.constant 0 : index
    %13 = vector.load %arg1[%c1, %c0_17, %c0_18] : memref<5x48x64xf32, #tpu.memory_space<vmem>>, vector<1x48x64xf32>
    %14 = vector.shape_cast %13 : vector<1x48x64xf32> to vector<48x64xf32>
    %cst_19 = arith.constant dense<0.000000e+00> : vector<24x64xf32>
    %15 = tpu.matmul %12, %14, %cst_19 {dimension_numbers = #tpu.dot_dimension_numbers<[1], [0], [0], [1], [0, 0, 1, 1], [], []>} : vector<24x48xf32>, vector<48x64xf32>, vector<24x64xf32> -> vector<24x64xf32>
    %c0_20 = arith.constant 0 : index
    %c0_21 = arith.constant 0 : index
    %16 = vector.load %arg14[%c0_20, %c0_21] : memref<24x48xf32, #tpu.memory_space<vmem>>, vector<24x48xf32>
    %c2_22 = arith.constant 2 : index
    %c0_23 = arith.constant 0 : index
    %c0_24 = arith.constant 0 : index
    %17 = vector.load %arg1[%c2_22, %c0_23, %c0_24] : memref<5x48x64xf32, #tpu.memory_space<vmem>>, vector<1x48x64xf32>
    %18 = vector.shape_cast %17 : vector<1x48x64xf32> to vector<48x64xf32>
    %cst_25 = arith.constant dense<0.000000e+00> : vector<24x64xf32>
    %19 = tpu.matmul %16, %18, %cst_25 {dimension_numbers = #tpu.dot_dimension_numbers<[1], [0], [0], [1], [0, 0, 1, 1], [], []>} : vector<24x48xf32>, vector<48x64xf32>, vector<24x64xf32> -> vector<24x64xf32>
    %c0_26 = arith.constant 0 : index
    %c0_27 = arith.constant 0 : index
    %20 = vector.load %arg14[%c0_26, %c0_27] : memref<24x48xf32, #tpu.memory_space<vmem>>, vector<24x48xf32>
    %c3 = arith.constant 3 : index
    %c0_28 = arith.constant 0 : index
    %c0_29 = arith.constant 0 : index
    %21 = vector.load %arg1[%c3, %c0_28, %c0_29] : memref<5x48x64xf32, #tpu.memory_space<vmem>>, vector<1x48x64xf32>
    %22 = vector.shape_cast %21 : vector<1x48x64xf32> to vector<48x64xf32>
    %cst_30 = arith.constant dense<0.000000e+00> : vector<24x64xf32>
    %23 = tpu.matmul %20, %22, %cst_30 {dimension_numbers = #tpu.dot_dimension_numbers<[1], [0], [0], [1], [0, 0, 1, 1], [], []>} : vector<24x48xf32>, vector<48x64xf32>, vector<24x64xf32> -> vector<24x64xf32>
    %c0_31 = arith.constant 0 : index
    %c0_32 = arith.constant 0 : index
    %24 = vector.load %arg14[%c0_31, %c0_32] : memref<24x48xf32, #tpu.memory_space<vmem>>, vector<24x48xf32>
    %c4 = arith.constant 4 : index
    %c0_33 = arith.constant 0 : index
    %c0_34 = arith.constant 0 : index
    %25 = vector.load %arg1[%c4, %c0_33, %c0_34] : memref<5x48x64xf32, #tpu.memory_space<vmem>>, vector<1x48x64xf32>
    %26 = vector.shape_cast %25 : vector<1x48x64xf32> to vector<48x64xf32>
    %cst_35 = arith.constant dense<0.000000e+00> : vector<24x64xf32>
    %27 = tpu.matmul %24, %26, %cst_35 {dimension_numbers = #tpu.dot_dimension_numbers<[1], [0], [0], [1], [0, 0, 1, 1], [], []>} : vector<24x48xf32>, vector<48x64xf32>, vector<24x64xf32> -> vector<24x64xf32>
    %28 = vector.extract_strided_slice %11 {offsets = [0, 0], sizes = [8, 64], strides = [1, 1]} : vector<24x64xf32> to vector<8x64xf32>
    %c0_36 = arith.constant 0 : index
    %c0_37 = arith.constant 0 : index
    %29 = vector.load %arg2[%c0_36, %c0_37] : memref<1x64xf32, #tpu.memory_space<vmem>>, vector<1x64xf32>
    %30 = vector.broadcast %29 : vector<1x64xf32> to vector<8x64xf32>
    %31 = arith.addf %28, %30 : vector<8x64xf32>
    %32 = vector.extract_strided_slice %15 {offsets = [1, 0], sizes = [8, 64], strides = [1, 1]} : vector<24x64xf32> to vector<8x64xf32>
    %33 = arith.addf %31, %32 : vector<8x64xf32>
    %34 = vector.extract_strided_slice %19 {offsets = [2, 0], sizes = [8, 64], strides = [1, 1]} : vector<24x64xf32> to vector<8x64xf32>
    %35 = arith.addf %33, %34 : vector<8x64xf32>
    %36 = vector.extract_strided_slice %23 {offsets = [3, 0], sizes = [8, 64], strides = [1, 1]} : vector<24x64xf32> to vector<8x64xf32>
    %37 = arith.addf %35, %36 : vector<8x64xf32>
    %38 = vector.extract_strided_slice %27 {offsets = [4, 0], sizes = [8, 64], strides = [1, 1]} : vector<24x64xf32> to vector<8x64xf32>
    %39 = arith.addf %37, %38 : vector<8x64xf32>
    %40 = vector.extract_strided_slice %11 {offsets = [12, 0], sizes = [8, 64], strides = [1, 1]} : vector<24x64xf32> to vector<8x64xf32>
    %c0_38 = arith.constant 0 : index
    %c0_39 = arith.constant 0 : index
    %41 = vector.load %arg2[%c0_38, %c0_39] : memref<1x64xf32, #tpu.memory_space<vmem>>, vector<1x64xf32>
    %42 = vector.broadcast %41 : vector<1x64xf32> to vector<8x64xf32>
    %43 = arith.addf %40, %42 : vector<8x64xf32>
    %44 = vector.extract_strided_slice %15 {offsets = [13, 0], sizes = [8, 64], strides = [1, 1]} : vector<24x64xf32> to vector<8x64xf32>
    %45 = arith.addf %43, %44 : vector<8x64xf32>
    %46 = vector.extract_strided_slice %19 {offsets = [14, 0], sizes = [8, 64], strides = [1, 1]} : vector<24x64xf32> to vector<8x64xf32>
    %47 = arith.addf %45, %46 : vector<8x64xf32>
    %48 = vector.extract_strided_slice %23 {offsets = [15, 0], sizes = [8, 64], strides = [1, 1]} : vector<24x64xf32> to vector<8x64xf32>
    %49 = arith.addf %47, %48 : vector<8x64xf32>
    %50 = vector.extract_strided_slice %27 {offsets = [16, 0], sizes = [8, 64], strides = [1, 1]} : vector<24x64xf32> to vector<8x64xf32>
    %51 = arith.addf %49, %50 : vector<8x64xf32>
    %c2_40 = arith.constant 2 : index
    %c16 = arith.constant 16 : index
    %52 = vector.load %arg15[%c2_40, %c16] : memref<24x96xf32, #tpu.memory_space<vmem>>, vector<8x64xf32>
    tpu.vector_store %arg15[%c2_40, %c16], %39 {strides = array<i32>} : memref<24x96xf32, #tpu.memory_space<vmem>>, vector<8x64xf32>,
    %c14_41 = arith.constant 14 : index
    %c16_42 = arith.constant 16 : index
    %53 = vector.load %arg15[%c14_41, %c16_42] : memref<24x96xf32, #tpu.memory_space<vmem>>, vector<8x64xf32>
    tpu.vector_store %arg15[%c14_41, %c16_42], %51 {strides = array<i32>} : memref<24x96xf32, #tpu.memory_space<vmem>>, vector<8x64xf32>,
    %c0_43 = arith.constant 0 : index
    %c0_44 = arith.constant 0 : index
    %54 = vector.load %arg15[%c0_43, %c0_44] : memref<24x96xf32, #tpu.memory_space<vmem>>, vector<24x96xf32>
    %c0_45 = arith.constant 0 : index
    %c0_46 = arith.constant 0 : index
    %c0_47 = arith.constant 0 : index
    %55 = vector.load %arg3[%c0_45, %c0_46, %c0_47] : memref<3x96x80xf32, #tpu.memory_space<vmem>>, vector<1x96x80xf32>
    %56 = vector.shape_cast %55 : vector<1x96x80xf32> to vector<96x80xf32>
    %cst_48 = arith.constant dense<0.000000e+00> : vector<24x80xf32>
    %57 = tpu.matmul %54, %56, %cst_48 {dimension_numbers = #tpu.dot_dimension_numbers<[1], [0], [0], [1], [0, 0, 1, 1], [], []>} : vector<24x96xf32>, vector<96x80xf32>, vector<24x80xf32> -> vector<24x80xf32>
    %c0_49 = arith.constant 0 : index
    %c0_50 = arith.constant 0 : index
    %58 = vector.load %arg15[%c0_49, %c0_50] : memref<24x96xf32, #tpu.memory_space<vmem>>, vector<24x96xf32>
    %c1_51 = arith.constant 1 : index
    %c0_52 = arith.constant 0 : index
    %c0_53 = arith.constant 0 : index
    %59 = vector.load %arg3[%c1_51, %c0_52, %c0_53] : memref<3x96x80xf32, #tpu.memory_space<vmem>>, vector<1x96x80xf32>
    %60 = vector.shape_cast %59 : vector<1x96x80xf32> to vector<96x80xf32>
    %cst_54 = arith.constant dense<0.000000e+00> : vector<24x80xf32>
    %61 = tpu.matmul %58, %60, %cst_54 {dimension_numbers = #tpu.dot_dimension_numbers<[1], [0], [0], [1], [0, 0, 1, 1], [], []>} : vector<24x96xf32>, vector<96x80xf32>, vector<24x80xf32> -> vector<24x80xf32>
    %c0_55 = arith.constant 0 : index
    %c0_56 = arith.constant 0 : index
    %62 = vector.load %arg15[%c0_55, %c0_56] : memref<24x96xf32, #tpu.memory_space<vmem>>, vector<24x96xf32>
    %c2_57 = arith.constant 2 : index
    %c0_58 = arith.constant 0 : index
    %c0_59 = arith.constant 0 : index
    %63 = vector.load %arg3[%c2_57, %c0_58, %c0_59] : memref<3x96x80xf32, #tpu.memory_space<vmem>>, vector<1x96x80xf32>
    %64 = vector.shape_cast %63 : vector<1x96x80xf32> to vector<96x80xf32>
    %cst_60 = arith.constant dense<0.000000e+00> : vector<24x80xf32>
    %65 = tpu.matmul %62, %64, %cst_60 {dimension_numbers = #tpu.dot_dimension_numbers<[1], [0], [0], [1], [0, 0, 1, 1], [], []>} : vector<24x96xf32>, vector<96x80xf32>, vector<24x80xf32> -> vector<24x80xf32>
    %66 = vector.extract_strided_slice %57 {offsets = [0, 0], sizes = [10, 80], strides = [1, 1]} : vector<24x80xf32> to vector<10x80xf32>
    %c0_61 = arith.constant 0 : index
    %c0_62 = arith.constant 0 : index
    %67 = vector.load %arg4[%c0_61, %c0_62] : memref<1x80xf32, #tpu.memory_space<vmem>>, vector<1x80xf32>
    %68 = vector.broadcast %67 : vector<1x80xf32> to vector<10x80xf32>
    %69 = arith.addf %66, %68 : vector<10x80xf32>
    %70 = vector.extract_strided_slice %61 {offsets = [1, 0], sizes = [10, 80], strides = [1, 1]} : vector<24x80xf32> to vector<10x80xf32>
    %71 = arith.addf %69, %70 : vector<10x80xf32>
    %72 = vector.extract_strided_slice %65 {offsets = [2, 0], sizes = [10, 80], strides = [1, 1]} : vector<24x80xf32> to vector<10x80xf32>
    %73 = arith.addf %71, %72 : vector<10x80xf32>
    %cst_63 = arith.constant 0.000000e+00 : f32
    %74 = vector.broadcast %cst_63 : f32 to vector<10x80xf32>
    %75 = arith.cmpf oge, %73, %74 : vector<10x80xf32>
    %cst_64 = arith.constant 0.00999999977 : f32
    %76 = vector.broadcast %cst_64 : f32 to vector<10x80xf32>
    %77 = arith.mulf %76, %73 : vector<10x80xf32>
    %78 = arith.select %75, %73, %77 : vector<10x80xi1>, vector<10x80xf32>
    %79 = vector.extract_strided_slice %57 {offsets = [12, 0], sizes = [10, 80], strides = [1, 1]} : vector<24x80xf32> to vector<10x80xf32>
    %c0_65 = arith.constant 0 : index
    %c0_66 = arith.constant 0 : index
    %80 = vector.load %arg4[%c0_65, %c0_66] : memref<1x80xf32, #tpu.memory_space<vmem>>, vector<1x80xf32>
    %81 = vector.broadcast %80 : vector<1x80xf32> to vector<10x80xf32>
    %82 = arith.addf %79, %81 : vector<10x80xf32>
    %83 = vector.extract_strided_slice %61 {offsets = [13, 0], sizes = [10, 80], strides = [1, 1]} : vector<24x80xf32> to vector<10x80xf32>
    %84 = arith.addf %82, %83 : vector<10x80xf32>
    %85 = vector.extract_strided_slice %65 {offsets = [14, 0], sizes = [10, 80], strides = [1, 1]} : vector<24x80xf32> to vector<10x80xf32>
    %86 = arith.addf %84, %85 : vector<10x80xf32>
    %cst_67 = arith.constant 0.000000e+00 : f32
    %87 = vector.broadcast %cst_67 : f32 to vector<10x80xf32>
    %88 = arith.cmpf oge, %86, %87 : vector<10x80xf32>
    %cst_68 = arith.constant 0.00999999977 : f32
    %89 = vector.broadcast %cst_68 : f32 to vector<10x80xf32>
    %90 = arith.mulf %89, %86 : vector<10x80xf32>
    %91 = arith.select %88, %86, %90 : vector<10x80xi1>, vector<10x80xf32>
    %92 = tpu.concatenate %78, %91 in 0 : vector<10x80xf32>, vector<10x80xf32> -> vector<20x80xf32>
    %c0_69 = arith.constant 0 : index
    %c0_70 = arith.constant 0 : index
    %93 = vector.load %arg5[%c0_69, %c0_70] : memref<80x320xf32, #tpu.memory_space<vmem>>, vector<80x320xf32>
    %cst_71 = arith.constant dense<0.000000e+00> : vector<20x320xf32>
    %94 = tpu.matmul %92, %93, %cst_71 {dimension_numbers = #tpu.dot_dimension_numbers<[1], [0], [0], [1], [0, 0, 1, 1], [], []>} : vector<20x80xf32>, vector<80x320xf32>, vector<20x320xf32> -> vector<20x320xf32>
    %c0_72 = arith.constant 0 : index
    %c0_73 = arith.constant 0 : index
    %95 = vector.load %arg6[%c0_72, %c0_73] : memref<1x32xf32, #tpu.memory_space<vmem>>, vector<1x32xf32>
    %96 = vector.extract_strided_slice %94 {offsets = [0, 0], sizes = [1, 32], strides = [1, 1]} : vector<20x320xf32> to vector<1x32xf32>
    %97 = arith.addf %95, %96 : vector<1x32xf32>
    %98 = vector.extract_strided_slice %94 {offsets = [1, 32], sizes = [1, 32], strides = [1, 1]} : vector<20x320xf32> to vector<1x32xf32>
    %99 = arith.addf %97, %98 : vector<1x32xf32>
    %100 = vector.extract_strided_slice %94 {offsets = [2, 64], sizes = [1, 32], strides = [1, 1]} : vector<20x320xf32> to vector<1x32xf32>
    %101 = arith.addf %99, %100 : vector<1x32xf32>
    %102 = vector.extract_strided_slice %94 {offsets = [3, 96], sizes = [1, 32], strides = [1, 1]} : vector<20x320xf32> to vector<1x32xf32>
    %103 = arith.addf %101, %102 : vector<1x32xf32>
    %104 = vector.extract_strided_slice %94 {offsets = [4, 128], sizes = [1, 32], strides = [1, 1]} : vector<20x320xf32> to vector<1x32xf32>
    %105 = arith.addf %103, %104 : vector<1x32xf32>
    %106 = vector.extract_strided_slice %94 {offsets = [5, 160], sizes = [1, 32], strides = [1, 1]} : vector<20x320xf32> to vector<1x32xf32>
    %107 = arith.addf %105, %106 : vector<1x32xf32>
    %108 = vector.extract_strided_slice %94 {offsets = [6, 192], sizes = [1, 32], strides = [1, 1]} : vector<20x320xf32> to vector<1x32xf32>
    %109 = arith.addf %107, %108 : vector<1x32xf32>
    %110 = vector.extract_strided_slice %94 {offsets = [7, 224], sizes = [1, 32], strides = [1, 1]} : vector<20x320xf32> to vector<1x32xf32>
    %111 = arith.addf %109, %110 : vector<1x32xf32>
    %112 = vector.extract_strided_slice %94 {offsets = [8, 256], sizes = [1, 32], strides = [1, 1]} : vector<20x320xf32> to vector<1x32xf32>
    %113 = arith.addf %111, %112 : vector<1x32xf32>
    %114 = vector.extract_strided_slice %94 {offsets = [9, 288], sizes = [1, 32], strides = [1, 1]} : vector<20x320xf32> to vector<1x32xf32>
    %115 = arith.addf %113, %114 : vector<1x32xf32>
    %c0_74 = arith.constant 0 : index
    %c0_75 = arith.constant 0 : index
    %116 = vector.load %arg6[%c0_74, %c0_75] : memref<1x32xf32, #tpu.memory_space<vmem>>, vector<1x32xf32>
    %117 = vector.extract_strided_slice %94 {offsets = [10, 0], sizes = [1, 32], strides = [1, 1]} : vector<20x320xf32> to vector<1x32xf32>
    %118 = arith.addf %116, %117 : vector<1x32xf32>
    %119 = vector.extract_strided_slice %94 {offsets = [11, 32], sizes = [1, 32], strides = [1, 1]} : vector<20x320xf32> to vector<1x32xf32>
    %120 = arith.addf %118, %119 : vector<1x32xf32>
    %121 = vector.extract_strided_slice %94 {offsets = [12, 64], sizes = [1, 32], strides = [1, 1]} : vector<20x320xf32> to vector<1x32xf32>
    %122 = arith.addf %120, %121 : vector<1x32xf32>
    %123 = vector.extract_strided_slice %94 {offsets = [13, 96], sizes = [1, 32], strides = [1, 1]} : vector<20x320xf32> to vector<1x32xf32>
    %124 = arith.addf %122, %123 : vector<1x32xf32>
    %125 = vector.extract_strided_slice %94 {offsets = [14, 128], sizes = [1, 32], strides = [1, 1]} : vector<20x320xf32> to vector<1x32xf32>
    %126 = arith.addf %124, %125 : vector<1x32xf32>
    %127 = vector.extract_strided_slice %94 {offsets = [15, 160], sizes = [1, 32], strides = [1, 1]} : vector<20x320xf32> to vector<1x32xf32>
    %128 = arith.addf %126, %127 : vector<1x32xf32>
    %129 = vector.extract_strided_slice %94 {offsets = [16, 192], sizes = [1, 32], strides = [1, 1]} : vector<20x320xf32> to vector<1x32xf32>
    %130 = arith.addf %128, %129 : vector<1x32xf32>
    %131 = vector.extract_strided_slice %94 {offsets = [17, 224], sizes = [1, 32], strides = [1, 1]} : vector<20x320xf32> to vector<1x32xf32>
    %132 = arith.addf %130, %131 : vector<1x32xf32>
    %133 = vector.extract_strided_slice %94 {offsets = [18, 256], sizes = [1, 32], strides = [1, 1]} : vector<20x320xf32> to vector<1x32xf32>
    %134 = arith.addf %132, %133 : vector<1x32xf32>
    %135 = vector.extract_strided_slice %94 {offsets = [19, 288], sizes = [1, 32], strides = [1, 1]} : vector<20x320xf32> to vector<1x32xf32>
    %136 = arith.addf %134, %135 : vector<1x32xf32>
    %137 = tpu.concatenate %115, %136 in 0 : vector<1x32xf32>, vector<1x32xf32> -> vector<2x32xf32>
    %c0_76 = arith.constant 0 : index
    %c0_77 = arith.constant 0 : index
    %138 = vector.load %arg7[%c0_76, %c0_77] : memref<32x32xf32, #tpu.memory_space<vmem>>, vector<32x32xf32>
    %cst_78 = arith.constant dense<0.000000e+00> : vector<2x32xf32>
    %139 = tpu.matmul %137, %138, %cst_78 {dimension_numbers = #tpu.dot_dimension_numbers<[1], [0], [0], [1], [0, 0, 1, 1], [], []>} : vector<2x32xf32>, vector<32x32xf32>, vector<2x32xf32> -> vector<2x32xf32>
    %c0_79 = arith.constant 0 : index
    %c0_80 = arith.constant 0 : index
    %140 = vector.load %arg8[%c0_79, %c0_80] : memref<1x32xf32, #tpu.memory_space<vmem>>, vector<1x32xf32>
    %141 = vector.broadcast %140 : vector<1x32xf32> to vector<2x32xf32>
    %142 = arith.addf %139, %141 : vector<2x32xf32>
    %cst_81 = arith.constant 0.000000e+00 : f32
    %143 = vector.broadcast %cst_81 : f32 to vector<2x32xf32>
    %144 = arith.cmpf oge, %142, %143 : vector<2x32xf32>
    %cst_82 = arith.constant 0.00999999977 : f32
    %145 = vector.broadcast %cst_82 : f32 to vector<2x32xf32>
    %146 = arith.mulf %145, %142 : vector<2x32xf32>
    %147 = arith.select %144, %142, %146 : vector<2x32xi1>, vector<2x32xf32>
    %c0_83 = arith.constant 0 : index
    %c0_84 = arith.constant 0 : index
    %148 = vector.load %arg9[%c0_83, %c0_84] : memref<32x32xf32, #tpu.memory_space<vmem>>, vector<32x32xf32>
    %cst_85 = arith.constant dense<0.000000e+00> : vector<2x32xf32>
    %149 = tpu.matmul %147, %148, %cst_85 {dimension_numbers = #tpu.dot_dimension_numbers<[1], [0], [0], [1], [0, 0, 1, 1], [], []>} : vector<2x32xf32>, vector<32x32xf32>, vector<2x32xf32> -> vector<2x32xf32>
    %c0_86 = arith.constant 0 : index
    %c0_87 = arith.constant 0 : index
    %150 = vector.load %arg10[%c0_86, %c0_87] : memref<1x32xf32, #tpu.memory_space<vmem>>, vector<1x32xf32>
    %151 = vector.broadcast %150 : vector<1x32xf32> to vector<2x32xf32>
    %152 = arith.addf %149, %151 : vector<2x32xf32>
    %cst_88 = arith.constant 0.000000e+00 : f32
    %153 = vector.broadcast %cst_88 : f32 to vector<2x32xf32>
    %154 = arith.cmpf oge, %152, %153 : vector<2x32xf32>
    %cst_89 = arith.constant 0.00999999977 : f32
    %155 = vector.broadcast %cst_89 : f32 to vector<2x32xf32>
    %156 = arith.mulf %155, %152 : vector<2x32xf32>
    %157 = arith.select %154, %152, %156 : vector<2x32xi1>, vector<2x32xf32>
    %c0_90 = arith.constant 0 : index
    %c0_91 = arith.constant 0 : index
    %158 = vector.load %arg11[%c0_90, %c0_91] : memref<32x6xf32, #tpu.memory_space<vmem>>, vector<32x6xf32>
    %cst_92 = arith.constant dense<0.000000e+00> : vector<2x6xf32>
    %159 = tpu.matmul %157, %158, %cst_92 {dimension_numbers = #tpu.dot_dimension_numbers<[1], [0], [0], [1], [0, 0, 1, 1], [], []>} : vector<2x32xf32>, vector<32x6xf32>, vector<2x6xf32> -> vector<2x6xf32>
    %c0_93 = arith.constant 0 : index
    %c0_94 = arith.constant 0 : index
    %160 = vector.load %arg12[%c0_93, %c0_94] : memref<1x6xf32, #tpu.memory_space<vmem>>, vector<1x6xf32>
    %161 = vector.broadcast %160 : vector<1x6xf32> to vector<2x6xf32>
    %162 = arith.addf %159, %161 : vector<2x6xf32>
    %cst_95 = arith.constant dense<0xFF800000> : vector<2xf32>
    %163 = vector.multi_reduction <maximumf>, %162, %cst_95 [1] : vector<2x6xf32> to vector<2xf32>
    %164 = vector.shape_cast %163 : vector<2xf32> to vector<2x1xf32>
    %165 = vector.broadcast %164 : vector<2x1xf32> to vector<2x6xf32>
    %166 = arith.subf %162, %165 : vector<2x6xf32>
    %167 = math.exp %166 : vector<2x6xf32>
    %cst_96 = arith.constant dense<0.000000e+00> : vector<2xf32>
    %168 = vector.multi_reduction <add>, %167, %cst_96 [1] : vector<2x6xf32> to vector<2xf32>
    %169 = vector.shape_cast %168 : vector<2xf32> to vector<2x1xf32>
    %170 = tpu.reciprocal %169 {approx = true} : vector<2x1xf32> -> vector<2x1xf32>
    %171 = arith.mulf %169, %170 : vector<2x1xf32>
    %cst_97 = arith.constant 2.000000e+00 : f32
    %172 = vector.broadcast %cst_97 : f32 to vector<2x1xf32>
    %173 = arith.subf %172, %171 : vector<2x1xf32>
    %174 = arith.mulf %170, %173 : vector<2x1xf32>
    %175 = vector.broadcast %174 : vector<2x1xf32> to vector<2x6xf32>
    %176 = arith.mulf %167, %175 : vector<2x6xf32>
    %c0_98 = arith.constant 0 : index
    %c0_99 = arith.constant 0 : index
    %177 = vector.load %arg13[%c0_98, %c0_99] : memref<2x6xf32, #tpu.memory_space<vmem>>, vector<2x6xf32>
    tpu.vector_store %arg13[%c0_98, %c0_99], %176 {strides = array<i32>} : memref<2x6xf32, #tpu.memory_space<vmem>>, vector<2x6xf32>,
    return
  }
}

</mosaic_0001>

<bundles_post_ra>
// kernel: forward.1
= control target key start
LH: loop header
LB: loop body
LE: loop exit
PB: predicated region body
PF: predicated region fallthrough
CT: control target
= control target key end

     0   :  { %s2363_s14 = smov 8   ;;  %v2364_v3 = vmov 0.0|0.0   ;;  %vm45_vm0 = vcmask 392192   ;;  %v2365_v9 = vmov 0.0   ;;  %vm2366_vm1 = vmmov 0   ;;  %s3032_s0 = inlined_call_operand.vmem [shape: f32[16,32], index: 0, kind: input, shape index: {}]   ;;  %s3033_s1 = inlined_call_operand.vmem [shape: f32[5,48,64], index: 1, kind: input, shape index: {}]   ;;  %s3034_s2 = inlined_call_operand.vmem [shape: f32[1,64], index: 2, kind: input, shape index: {}]   ;;  %s3035_s3 = inlined_call_operand.vmem [shape: f32[3,96,80], index: 3, kind: input, shape index: {}]   ;;  %s3036_s4 = inlined_call_operand.vmem [shape: f32[1,80], index: 4, kind: input, shape index: {}]   ;;  %s3037_s5 = inlined_call_operand.vmem [shape: f32[80,320], index: 5, kind: input, shape index: {}]   ;;  %s3038_s6 = inlined_call_operand.vmem [shape: f32[1,32], index: 6, kind: input, shape index: {}]   ;;  %s3039_s7 = inlined_call_operand.vmem [shape: f32[32,32], index: 7, kind: input, shape index: {}]   ;;  %s3040_s8 = inlined_call_operand.vmem [shape: f32[1,32], index: 8, kind: input, shape index: {}]   ;;  %s3041_s9 = inlined_call_operand.vmem [shape: f32[32,32], index: 9, kind: input, shape index: {}]   ;;  %s3042_s10 = inlined_call_operand.vmem [shape: f32[1,32], index: 10, kind: input, shape index: {}]   ;;  %s3043_s11 = inlined_call_operand.vmem [shape: f32[32,6], index: 11, kind: input, shape index: {}]   ;;  %s3044_s12 = inlined_call_operand.vmem [shape: f32[1,6], index: 12, kind: input, shape index: {}]   ;;  %s3045_s13 = inlined_call_operand.hbm [shape: f32[2,6], index: 13, kind: output, shape index: {}]  }
   0x1   :  { %v53_v0 = vld [vmem:[%s3032_s0] sm:$0xff]  ;;  %v60_v1 = vld [vmem:[%s3032_s0 + $0x8] sm:$0xff]  ;;  %2173 = vmatprep.subr.bf16.mxu0 %v2364_v3  ;;  %v1706_v5 = vld [vmem:[%s3033_s1 + $0x30] sm:$0xff]  ;;  %2182 = vmatprep.subr.bf16.mxu1 %v2364_v3  ;;  %46 = vst.msk [vmem:[#allocation2] sm:$0xff] %vm45_vm0, %v2365_v9 }
   0x2   :  { %v69_v2 = vld [vmem:[%s3033_s1] sm:$0xff]  ;;  %55 = vrot.lane.b32.xlu0 %v53_v0, %s2363_s14  ;;  %v70_v4 = vld [vmem:[%s3033_s1 + $0x8] sm:$0xff]  ;;  %v1707_v6 = vld [vmem:[%s3033_s1 + $0x38] sm:$0xff]  ;;  %47 = vst.msk [vmem:[#allocation2 + $0x8] sm:$0xff] %vm45_vm0, %v2365_v9  ;;  %1919 = vmatprep.mubr.msk.f32.mxu0 %vm2366_vm1, %v2365_v9 }
   0x3   :  { %v2174_v7 = vpack.c.bf16 %v70_v4, %v69_v2  ;;  %v2183_v8 = vpack.c.bf16 %v1707_v6, %v1706_v5  ;;  %48 = vst.msk [vmem:[#allocation2 + $0x10] sm:$0xff] %vm45_vm0, %v2365_v9  ;;  %v71_v10 = vld [vmem:[%s3033_s1 + $0x10] sm:$0xff]  ;;  %v72_v11 = vld [vmem:[%s3033_s1 + $0x18] sm:$0xff]  ;;  %v1708_v12 = vld [vmem:[%s3033_s1 + $0x40] sm:$0xff]  ;;  %1940 = vmatprep.mubr.msk.f32.mxu1 %vm2366_vm1, %v2365_v9 }
   0x4   :  { %v1709_v13 = vld [vmem:[%s3033_s1 + $0x48] sm:$0xff]  ;;  %v2177_v14 = vpack.c.bf16 %v72_v11, %v71_v10  ;;  %v73_v16 = vld [vmem:[%s3033_s1 + $0x20] sm:$0xff]  ;;  %v1710_v18 = vld [vmem:[%s3033_s1 + $0x50] sm:$0xff] }
   0x5   :  { %2175 = vmatpush3.bf16.msra.mxu0 %v2174_v7  ;;  %2184 = vmatpush3.bf16.msra.mxu1 %v2183_v8  ;;  %v2186_v15 = vpack.c.bf16 %v1709_v13, %v1708_v12  ;;  %v74_v17 = vld [vmem:[%s3033_s1 + $0x28] sm:$0xff]  ;;  %v1711_v19 = vld [vmem:[%s3033_s1 + $0x58] sm:$0xff] }
   0x6   :  { %62 = vrot.lane.b32.xlu0 %v60_v1, %s2363_s14  ;;  %2176 = vmatprep.subr.bf16.mxu0 %v2364_v3  ;;  %v2180_v20 = vpack.c.bf16 %v74_v17, %v73_v16  ;;  %v2189_v21 = vpack.c.bf16 %v1711_v19, %v1710_v18 }
   0x7   :  { %2185 = vmatprep.subr.bf16.mxu1 %v2364_v3 }
   0x9   :  { %2178 = vmatpush3.bf16.msra.mxu0 %v2177_v14  ;;  %2187 = vmatpush3.bf16.msra.mxu1 %v2186_v15 }
   0xa   :  { %2179 = vmatprep.subr.bf16.mxu0 %v2364_v3  ;;  %2188 = vmatprep.subr.bf16.mxu1 %v2364_v3 }
   0xb   :  { %18 = vsyncpa [#allocation5], 0  ;;  %vm58_vm2 = vcmask 326720   ;;  %v1715_v23 = vld [vmem:[%s3033_s1 + $0x60] sm:$0xff]  ;;  %v1716_v24 = vld [vmem:[%s3033_s1 + $0x68] sm:$0xff]  ;;  %vm49_vm3 = vcmask 785408  }
   0xc   :  { %v1724_v25 = vld [vmem:[%s3033_s1 + $0x90] sm:$0xff]  ;;  %v1725_v26 = vld [vmem:[%s3033_s1 + $0x98] sm:$0xff]  ;;  %v2192_v28 = vpack.c.bf16 %v1716_v24, %v1715_v23  ;;  %v1726_v32 = vld [vmem:[%s3033_s1 + $0xa0] sm:$0xff]  ;;  %50 = vst.msk [vmem:[#allocation3] sm:$0xff] %vm49_vm3, %v2365_v9  ;;  %vm522_vm4 = vcmask 1046528   ;;  %vm530_vm5 = vcmask 1045504  }
   0xd   :  { %2181 = vmatpush3.bf16.msra.mxu0 %v2180_v20  ;;  %2190 = vmatpush3.bf16.msra.mxu1 %v2189_v21  ;;  %v2201_v29 = vpack.c.bf16 %v1725_v26, %v1724_v25  ;;  %v1717_v30 = vld [vmem:[%s3033_s1 + $0x70] sm:$0xff]  ;;  %v1718_v31 = vld [vmem:[%s3033_s1 + $0x78] sm:$0xff]  ;;  %v1727_v33 = vld [vmem:[%s3033_s1 + $0xa8] sm:$0xff]  ;;  %51 = vst.msk [vmem:[#allocation3 + $0x8] sm:$0xff] %vm49_vm3, %v2365_v9  ;;  %vm538_vm6 = vcmask 1044480   ;;  %vm546_vm7 = vcmask 1043456  }
   0xe   :  { %2191 = vmatprep.subr.bf16.mxu0 %v2364_v3  ;;  %2200 = vmatprep.subr.bf16.mxu1 %v2364_v3  ;;  %v2195_v35 = vpack.c.bf16 %v1718_v31, %v1717_v30  ;;  %v2204_v36 = vpack.c.bf16 %v1727_v33, %v1726_v32  ;;  %v1719_v37 = vld [vmem:[%s3033_s1 + $0x80] sm:$0xff]  ;;  %v1720_v38 = vld [vmem:[%s3033_s1 + $0x88] sm:$0xff]  ;;  %v1728_v39 = vld [vmem:[%s3033_s1 + $0xb0] sm:$0xff]  ;;  %52 = vst.msk [vmem:[#allocation3 + $0x10] sm:$0xff] %vm49_vm3, %v2365_v9  ;;  %s2367_s28 = smov 16   ;;  %vm584_vm8 = vcmask 654464  }
   0xf   :  { %v1729_v40 = vld [vmem:[%s3033_s1 + $0xb8] sm:$0xff]  ;;  %v2198_v42 = vpack.c.bf16 %v1720_v38, %v1719_v37  ;;  %v1733_v44 = vld [vmem:[%s3033_s1 + $0xc0] sm:$0xff]  ;;  %v1734_v45 = vld [vmem:[%s3033_s1 + $0xc8] sm:$0xff]  ;;  %vm596_vm9 = vcmask 650368   ;;  %vm594_vm10 = vcmask 654468   ;;  %vm980_vm12 = vcmask 654336  }
  0x10   :  { %v2207_v43 = vpack.c.bf16 %v1729_v40, %v1728_v39  ;;  %v2210_v47 = vpack.c.bf16 %v1734_v45, %v1733_v44  ;;  %v1735_v48 = vld [vmem:[%s3033_s1 + $0xd0] sm:$0xff]  ;;  %v1736_v49 = vld [vmem:[%s3033_s1 + $0xd8] sm:$0xff]  ;;  %v1737_v51 = vld [vmem:[%s3033_s1 + $0xe0] sm:$0xff] }
  0x11   :  { %v2213_v50 = vpack.c.bf16 %v1736_v49, %v1735_v48  ;;  %v1738_v52 = vld [vmem:[%s3033_s1 + $0xe8] sm:$0xff]  ;;  %v601_v54 = vld [vmem:[%s3035_s3] sm:$0xff]  ;;  %v603_v59 = vld [vmem:[%s3035_s3 + $0x10] sm:$0xff] }
  0x12   :  { %v2216_v53 = vpack.c.bf16 %v1738_v52, %v1737_v51  ;;  %v602_v55 = vld [vmem:[%s3035_s3 + $0x8] sm:$0xff]  ;;  %v1746_v56 = vld [vmem:[%s3035_s3 + $0x60] sm:$0xff]  ;;  %v604_v60 = vld [vmem:[%s3035_s3 + $0x18] sm:$0xff] }
  0x13   :  { %v2219_v57 = vpack.c.bf16 %v602_v55, %v601_v54  ;;  %v1747_v58 = vld [vmem:[%s3035_s3 + $0x68] sm:$0xff]  ;;  %v1748_v62 = vld [vmem:[%s3035_s3 + $0x70] sm:$0xff]  ;;  %v1749_v63 = vld [vmem:[%s3035_s3 + $0x78] sm:$0xff]  ;;  %v2222_v0 = vpack.c.bf16 %v604_v60, %v603_v59 }
  0x14   :  { %v2237_v61 = vpack.c.bf16 %v1747_v58, %v1746_v56  ;;  %v2240_v1 = vpack.c.bf16 %v1749_v63, %v1748_v62  ;;  %v605_v2 = vld [vmem:[%s3035_s3 + $0x20] sm:$0xff]  ;;  %v606_v4 = vld [vmem:[%s3035_s3 + $0x28] sm:$0xff]  ;;  %v607_v10 = vld [vmem:[%s3035_s3 + $0x30] sm:$0xff] }
  0x15   :  { %v1750_v5 = vld [vmem:[%s3035_s3 + $0x80] sm:$0xff]  ;;  %v1751_v6 = vld [vmem:[%s3035_s3 + $0x88] sm:$0xff]  ;;  %v2225_v7 = vpack.c.bf16 %v606_v4, %v605_v2  ;;  %v608_v11 = vld [vmem:[%s3035_s3 + $0x38] sm:$0xff] }
  0x16   :  { %v2243_v8 = vpack.c.bf16 %v1751_v6, %v1750_v5  ;;  %v1752_v12 = vld [vmem:[%s3035_s3 + $0x90] sm:$0xff]  ;;  %v1753_v13 = vld [vmem:[%s3035_s3 + $0x98] sm:$0xff]  ;;  %v2228_v14 = vpack.c.bf16 %v608_v11, %v607_v10  ;;  %v1742_v20 = vld [vmem:[%s3034_s2] ss:$0 sm:$0xff]  ;;  %s2371_s2 = smov 32  }
  0x17   :  { %v2246_v15 = vpack.c.bf16 %v1753_v13, %v1752_v12  ;;  %v609_v52 = vld [vmem:[%s3035_s3 + $0x40] sm:$0xff]  ;;  %v1755_v58 = vld [vmem:[%s3035_s3 + $0xa8] sm:$0xff]  ;;  %v611_v5 = vld [vmem:[%s3035_s3 + $0x50] sm:$0xff] }
  0x18   :  { %v612_v6 = vld [vmem:[%s3035_s3 + $0x58] sm:$0xff]  ;;  %v1756_v12 = vld [vmem:[%s3035_s3 + $0xb0] sm:$0xff] }
  0x19   :  { %v2234_v11 = vpack.c.bf16 %v612_v6, %v611_v5  ;;  %v1757_v13 = vld [vmem:[%s3035_s3 + $0xb8] sm:$0xff]  ;;  %v959_v5 = vld [vmem:[%s3037_s5 + $0x48] sm:$0xff]  ;;  %v958_v6 = vld [vmem:[%s3037_s5 + $0x40] sm:$0xff] }
  0x74   :  { %v56_v22 = vpop.permute.xlu0 %55 }
  0x75   :  { %59 = vst.msk [vmem:[#allocation2 + $0x2] sm:$0xff] %vm58_vm2, %v56_v22 }
  0x78   :  { %v63_v27 = vpop.permute.xlu0 %62 }
  0x79   :  { %65 = vst.msk [vmem:[#allocation2 + $0xe] sm:$0xff] %vm58_vm2, %v63_v27  ;;  %vm1412_vm2 = vcmask 1040384  }
  0x7c   :  { %v66_v34 = vld [vmem:[#allocation2] sm:$0xff] }
  0x7d   :  { %1920 = vmatmul.mubr.msk.f32.vlgmr.msra.gmra.mrb[0].mxu0 %vm45_vm0, %v66_v34  ;;  %1941 = vmatmul.mubr.msk.f32.vlgmr.msra.gmra.mrb[0].mxu1 %vm45_vm0, %v66_v34 }
  0x7e   :  { %2193 = vmatpush3.bf16.msra.mxu0 %v2192_v28  ;;  %2202 = vmatpush3.bf16.msra.mxu1 %v2201_v29 }
  0x7f   :  { %1922 = vmatprep.mubr.msk.f32.mxu0 %vm2366_vm1, %v2365_v9  ;;  %1943 = vmatprep.mubr.msk.f32.mxu1 %vm2366_vm1, %v2365_v9 }
  0x80   :  { %2194 = vmatprep.subr.bf16.mxu0 %v2364_v3  ;;  %v67_v41 = vld [vmem:[#allocation2 + $0x8] sm:$0xff]  ;;  %2203 = vmatprep.subr.bf16.mxu1 %v2364_v3  ;;  %v68_v46 = vld [vmem:[#allocation2 + $0x10] sm:$0xff] }
  0x81   :  { %1923 = vmatmul.mubr.msk.f32.gmra.mrb[2].mxu0 %vm45_vm0, %v67_v41  ;;  %1944 = vmatmul.mubr.msk.f32.gmra.mrb[2].mxu1 %vm45_vm0, %v67_v41 }
  0x82   :  { %2196 = vmatpush3.bf16.msra.mxu0 %v2195_v35  ;;  %2205 = vmatpush3.bf16.msra.mxu1 %v2204_v36 }
  0x83   :  { %1925 = vmatprep.mubr.msk.f32.mxu0 %vm2366_vm1, %v2365_v9  ;;  %1946 = vmatprep.mubr.msk.f32.mxu1 %vm2366_vm1, %v2365_v9 }
  0x84   :  { %2197 = vmatprep.subr.bf16.mxu0 %v2364_v3  ;;  %2206 = vmatprep.subr.bf16.mxu1 %v2364_v3 }
  0x85   :  { %1926 = vmatmul.mubr.msk.f32.gmra.mrb[4].mxu0 %vm45_vm0, %v68_v46  ;;  %1947 = vmatmul.mubr.msk.f32.gmra.mrb[4].mxu1 %vm45_vm0, %v68_v46 }
  0x86   :  { %2199 = vmatpush3.bf16.msra.mxu0 %v2198_v42  ;;  %2208 = vmatpush3.bf16.msra.mxu1 %v2207_v43 }
  0x87   :  { %1961 = vmatprep.mubr.msk.f32.mxu0 %vm2366_vm1, %v2365_v9  ;;  %1982 = vmatprep.mubr.msk.f32.mxu1 %vm2366_vm1, %v2365_v9 }
  0x88   :  { %2209 = vmatprep.subr.bf16.mxu0 %v2364_v3  ;;  %2218 = vmatprep.subr.bf16.mxu1 %v2364_v3 }
  0x89   :  { %1962 = vmatmul.mubr.msk.f32.vlgmr.msra.gmra.mrb[6].mxu0 %vm45_vm0, %v66_v34  ;;  %1983 = vmatmul.mubr.msk.f32.vlgmr.msra.gmra.mrb[6].mxu1 %vm45_vm0, %v66_v34 }
  0x8a   :  { %2211 = vmatpush3.bf16.msra.mxu0 %v2210_v47  ;;  %1964 = vmatprep.mubr.msk.f32.mxu0 %vm2366_vm1, %v2365_v9 }
  0x8b   :  { %1985 = vmatprep.mubr.msk.f32.mxu1 %vm2366_vm1, %v2365_v9  ;;  %2212 = vmatprep.subr.bf16.mxu0 %v2364_v3 }
  0x8c   :  { %2220 = vmatpush3.bf16.msra.mxu1 %v2219_v57  ;;  %v1754_v57 = vld [vmem:[%s3035_s3 + $0xa0] sm:$0xff] }
  0x8d   :  { %1965 = vmatmul.mubr.msk.f32.gmra.mrb[8].mxu0 %vm45_vm0, %v67_v41  ;;  %1986 = vmatmul.mubr.msk.f32.gmra.mrb[8].mxu1 %vm45_vm0, %v67_v41  ;;  %v2249_v62 = vpack.c.bf16 %v1755_v58, %v1754_v57  ;;  %v950_v57 = vld [vmem:[%s3037_s5] sm:$0xff] }
  0x8e   :  { %2214 = vmatpush3.bf16.msra.mxu0 %v2213_v50  ;;  %1967 = vmatprep.mubr.msk.f32.mxu0 %vm2366_vm1, %v2365_v9 }
  0x8f   :  { %1988 = vmatprep.mubr.msk.f32.mxu1 %vm2366_vm1, %v2365_v9  ;;  %2215 = vmatprep.subr.bf16.mxu0 %v2364_v3 }
  0x90   :  { %2221 = vmatprep.subr.bf16.mxu1 %v2364_v3 }
  0x91   :  { %1968 = vmatmul.mubr.msk.f32.gmra.mrb[10].mxu0 %vm45_vm0, %v68_v46  ;;  %1989 = vmatmul.mubr.msk.f32.gmra.mrb[10].mxu1 %vm45_vm0, %v68_v46 }
  0x92   :  { %2217 = vmatpush3.bf16.msra.mxu0 %v2216_v53  ;;  %2003 = vmatprep.mubr.msk.f32.mxu0 %vm2366_vm1, %v2365_v9  ;;  %v610_v53 = vld [vmem:[%s3035_s3 + $0x48] sm:$0xff] }
  0x93   :  { %2236 = vmatprep.subr.bf16.mxu0 %v2364_v3  ;;  %2036 = vmatprep.mubr.msk.f32.mxu1 %vm2366_vm1, %v2365_v9  ;;  %v2231_v56 = vpack.c.bf16 %v610_v53, %v609_v52  ;;  %v1771_v52 = vld [vmem:[%s3035_s3 + $0x110] sm:$0xff]  ;;  %v1772_v53 = vld [vmem:[%s3035_s3 + $0x118] sm:$0xff] }
  0x94   :  { %2223 = vmatpush3.bf16.msra.mxu1 %v2222_v0 }
  0x95   :  { %2004 = vmatmul.mubr.msk.f32.vlgmr.msra.gmra.mrb[12].mxu0 %vm45_vm0, %v66_v34  ;;  %2224 = vmatprep.subr.bf16.mxu1 %v2364_v3 }
  0x96   :  { %2006 = vmatprep.mubr.msk.f32.mxu0 %vm2366_vm1, %v2365_v9  ;;  %2238 = vmatpush3.bf16.msra.mxu0 %v2237_v61 }
  0x97   :  { %2239 = vmatprep.subr.bf16.mxu0 %v2364_v3 }
  0x98   :  { %2226 = vmatpush3.bf16.msra.mxu1 %v2225_v7 }
  0x99   :  { %2007 = vmatmul.mubr.msk.f32.gmra.mrb[14].mxu0 %vm45_vm0, %v67_v41  ;;  %2227 = vmatprep.subr.bf16.mxu1 %v2364_v3 }
  0x9a   :  { %2009 = vmatprep.mubr.msk.f32.mxu0 %vm2366_vm1, %v2365_v9  ;;  %2241 = vmatpush3.bf16.msra.mxu0 %v2240_v1 }
  0x9b   :  { %2242 = vmatprep.subr.bf16.mxu0 %v2364_v3 }
  0x9c   :  { %2229 = vmatpush3.bf16.msra.mxu1 %v2228_v14 }
  0x9d   :  { %2010 = vmatmul.mubr.msk.f32.gmra.mrb[16].mxu0 %vm45_vm0, %v68_v46  ;;  %2230 = vmatprep.subr.bf16.mxu1 %v2364_v3  ;;  %vm948_vm0 = vcmask 1041408  }
  0x9e   :  { %2069 = vmatprep.mubr.msk.f32.mxu0 %vm2366_vm1, %v2365_v9  ;;  %2244 = vmatpush3.bf16.msra.mxu0 %v2243_v8 }
  0x9f   :  { %2245 = vmatprep.subr.bf16.mxu0 %v2364_v3 }
  0xa0   :  { %2232 = vmatpush3.bf16.msra.mxu1 %v2231_v56  ;;  %v954_v56 = vld [vmem:[%s3037_s5 + $0x20] sm:$0xff] }
  0xa1   :  { %2233 = vmatprep.subr.bf16.mxu1 %v2364_v3 }
  0xa2   :  { %2247 = vmatpush3.bf16.msra.mxu0 %v2246_v15 }
  0xa3   :  { %2248 = vmatprep.subr.bf16.mxu0 %v2364_v3 }
  0xa4   :  { %2235 = vmatpush3.bf16.msra.mxu1 %v2234_v11  ;;  %v963_v11 = vld [vmem:[%s3037_s5 + $0x68] sm:$0xff] }
  0xa5   :  { %2254 = vmatprep.subr.bf16.mxu1 %v2364_v3 }
  0xa6   :  { %2250 = vmatpush3.bf16.msra.mxu0 %v2249_v62 }
  0xa7   :  { %2251 = vmatprep.subr.bf16.mxu0 %v2364_v3 }
 0x150   :  { %v150_v16 = vpop.f32.mrb[0].mxu0  ;;  %v237_v17 = vpop.f32.mrb[0].mxu1 }
 0x151   :  { %v1921_v18 = vpop.f32.mrb[1].mxu0  ;;  %v1942_v19 = vpop.f32.mrb[1].mxu1  ;;  %v523_v23 = vrot.slane %v237_v17, 1  ;;  %v519_v27 = vadd.f32 %v1742_v20, %v150_v16  ;;  %v2252_v16 = vpack.c.bf16 %v1757_v13, %v1756_v12  ;;  %v966_v12 = vld [vmem:[%s3037_s5 + $0x80] sm:$0xff] }
 0x152   :  { %v2280_v13 = vpack.c.bf16 %v966_v12, %v963_v11 }
 0x153   :  { %2253 = vmatpush3.bf16.msra.mxu0 %v2252_v16  ;;  %v964_v16 = vld [vmem:[%s3037_s5 + $0x70] sm:$0xff] }
 0x154   :  { %v155_v21 = vpop.f32.mrb[2].mxu0  ;;  %v242_v22 = vpop.f32.mrb[2].mxu1 }
 0x155   :  { %v524_v24 = vrot.slane %v242_v22, 1  ;;  %v1924_v25 = vpop.f32.mrb[3].mxu0  ;;  %v1945_v26 = vpop.f32.mrb[3].mxu1  ;;  %v552_v36 = vadd.f32 %v1742_v20, %v155_v21 }
 0x157   :  { %v525_v28 = vsel %vm522_vm4, %v523_v23, %v524_v24 }
 0x158   :  { %v527_v29 = vadd.f32 %v525_v28, %v519_v27  ;;  %v160_v30 = vpop.f32.mrb[4].mxu0  ;;  %v247_v31 = vpop.f32.mrb[4].mxu1 }
 0x159   :  { %v553_v32 = vadd.f32 %v1742_v20, %v160_v30  ;;  %v555_v33 = vrot.slane %v247_v31, 1  ;;  %v1927_v34 = vpop.f32.mrb[5].mxu0  ;;  %v1948_v35 = vpop.f32.mrb[5].mxu1 }
 0x15a   :  { %v1762_v34 = vld [vmem:[%s3035_s3 + $0xc8] sm:$0xff] }
 0x15b   :  { %v556_v37 = vsel %vm522_vm4, %v524_v24, %v555_v33  ;;  %v560_v38 = vadd.f32 %v555_v33, %v553_v32  ;;  %v1761_v33 = vld [vmem:[%s3035_s3 + $0xc0] sm:$0xff] }
 0x15c   :  { %v559_v39 = vadd.f32 %v556_v37, %v552_v36  ;;  %v324_v40 = vpop.f32.mrb[6].mxu0  ;;  %v411_v41 = vpop.f32.mrb[6].mxu1  ;;  %v2255_v36 = vpack.c.bf16 %v1762_v34, %v1761_v33  ;;  %v1763_v37 = vld [vmem:[%s3035_s3 + $0xd0] sm:$0xff]  ;;  %v977_v33 = vld [vmem:[%s3037_s5 + $0xd8] sm:$0xff] }
 0x15d   :  { %v1963_v42 = vpop.f32.mrb[7].mxu0  ;;  %v1984_v43 = vpop.f32.mrb[7].mxu1  ;;  %v531_v46 = vrot.slane %v324_v40, 2  ;;  %v539_v47 = vrot.slane %v411_v41, 3  ;;  %v1765_v41 = vld [vmem:[%s3035_s3 + $0xe0] sm:$0xff]  ;;  %v976_v34 = vld [vmem:[%s3037_s5 + $0xd0] sm:$0xff] }
 0x15e   :  { %v1766_v42 = vld [vmem:[%s3035_s3 + $0xe8] sm:$0xff] }
 0x160   :  { %v329_v44 = vpop.f32.mrb[8].mxu0  ;;  %v416_v45 = vpop.f32.mrb[8].mxu1 }
 0x161   :  { %v532_v48 = vrot.slane %v329_v44, 2  ;;  %v540_v49 = vrot.slane %v416_v45, 3  ;;  %v1966_v50 = vpop.f32.mrb[9].mxu0  ;;  %v1987_v51 = vpop.f32.mrb[9].mxu1  ;;  %v2261_v44 = vpack.c.bf16 %v1766_v42, %v1765_v41  ;;  %v1767_v45 = vld [vmem:[%s3035_s3 + $0xf0] sm:$0xff] }
 0x162   :  { %v1770_v50 = vld [vmem:[%s3035_s3 + $0x108] sm:$0xff]  ;;  %v1776_v42 = vld [vmem:[%s3036_s4] ss:$0 sm:$0xff]  ;;  %s2369_s4 = smov 96  }
 0x163   :  { %v533_v54 = vsel %vm530_vm5, %v531_v46, %v532_v48  ;;  %v541_v55 = vsel %vm538_vm6, %v539_v47, %v540_v49  ;;  %v1768_v46 = vld [vmem:[%s3035_s3 + $0xf8] sm:$0xff] }
 0x164   :  { %v334_v59 = vpop.f32.mrb[10].mxu0  ;;  %v421_v60 = vpop.f32.mrb[10].mxu1  ;;  %v535_v61 = vadd.f32 %v533_v54, %v527_v29  ;;  %v2270_v54 = vpack.c.bf16 %v1772_v53, %v1771_v52 }
 0x165   :  { %v562_v63 = vrot.slane %v334_v59, 2  ;;  %v569_v0 = vrot.slane %v421_v60, 3  ;;  %v1969_v1 = vpop.f32.mrb[11].mxu0  ;;  %v1990_v2 = vpop.f32.mrb[11].mxu1  ;;  %v953_v59 = vld [vmem:[%s3037_s5 + $0x18] sm:$0xff]  ;;  %v952_v60 = vld [vmem:[%s3037_s5 + $0x10] sm:$0xff] }
 0x166   :  { %v543_v4 = vadd.f32 %v541_v55, %v535_v61  ;;  %v951_v55 = vld [vmem:[%s3037_s5 + $0x8] sm:$0xff]  ;;  %v2274_v62 = vpack.c.bf16 %v953_v59, %v950_v57  ;;  %v960_v1 = vld [vmem:[%s3037_s5 + $0x50] sm:$0xff] }
 0x167   :  { %v563_v7 = vsel %vm530_vm5, %v532_v48, %v562_v63  ;;  %v567_v8 = vadd.f32 %v562_v63, %v560_v38  ;;  %v570_v10 = vsel %vm538_vm6, %v540_v49, %v569_v0  ;;  %v1764_v38 = vld [vmem:[%s3035_s3 + $0xd8] sm:$0xff]  ;;  %v2264_v48 = vpack.c.bf16 %v1768_v46, %v1767_v45  ;;  %v1769_v49 = vld [vmem:[%s3035_s3 + $0x100] sm:$0xff]  ;;  %v955_v61 = vld [vmem:[%s3037_s5 + $0x28] sm:$0xff] }
 0x168   :  { %v566_v14 = vadd.f32 %v563_v7, %v559_v39  ;;  %v498_v15 = vpop.f32.mrb[12].mxu0  ;;  %v2258_v40 = vpack.c.bf16 %v1764_v38, %v1763_v37  ;;  %v2267_v51 = vpack.c.bf16 %v1770_v50, %v1769_v49  ;;  %v2272_v58 = vpack.c.bf16 %v954_v56, %v951_v55  ;;  %v956_v2 = vld [vmem:[%s3037_s5 + $0x30] sm:$0xff]  ;;  %v961_v7 = vld [vmem:[%s3037_s5 + $0x58] sm:$0xff] }
 0x169   :  { %v574_v17 = vadd.f32 %v569_v0, %v567_v8  ;;  %v2005_v18 = vpop.f32.mrb[13].mxu0  ;;  %v547_v21 = vrot.slane %v498_v15, 4  ;;  %v2293_v63 = vpack.c.bf16 %v955_v61, %v952_v60  ;;  %v957_v0 = vld [vmem:[%s3037_s5 + $0x38] sm:$0xff]  ;;  %v2278_v8 = vpack.c.bf16 %v959_v5, %v956_v2 }
 0x16a   :  { %v573_v19 = vadd.f32 %v570_v10, %v566_v14  ;;  %2273 = vmatprep.subr.bf16.mxu0 %v2272_v58  ;;  %v2296_v10 = vpack.c.bf16 %v961_v7, %v958_v6  ;;  %v962_v14 = vld [vmem:[%s3037_s5 + $0x60] sm:$0xff]  ;;  %v965_v15 = vld [vmem:[%s3037_s5 + $0x78] sm:$0xff]  ;;  %v967_v18 = vld [vmem:[%s3037_s5 + $0x88] sm:$0xff] }
 0x16c   :  { %v503_v20 = vpop.f32.mrb[14].mxu0 }
 0x16d   :  { %v548_v22 = vrot.slane %v503_v20, 4  ;;  %v2008_v23 = vpop.f32.mrb[15].mxu0  ;;  %v969_v20 = vld [vmem:[%s3037_s5 + $0x98] sm:$0xff] }
 0x16e   :  { %v968_v23 = vld [vmem:[%s3037_s5 + $0x90] sm:$0xff] }
 0x16f   :  { %v549_v24 = vsel %vm546_vm7, %v547_v21, %v548_v22  ;;  %v972_v21 = vld [vmem:[%s3037_s5 + $0xb0] sm:$0xff] }
 0x170   :  { %v508_v25 = vpop.f32.mrb[16].mxu0  ;;  %v551_v26 = vadd.f32 %v549_v24, %v543_v4  ;;  %v2276_v4 = vpack.c.bf16 %v960_v1, %v957_v0  ;;  %v2284_v22 = vpack.c.bf16 %v972_v21, %v969_v20  ;;  %v971_v24 = vld [vmem:[%s3037_s5 + $0xa8] sm:$0xff] }
 0x171   :  { %v576_v27 = vrot.slane %v508_v25, 4  ;;  %v2011_v28 = vpop.f32.mrb[17].mxu0  ;;  %v970_v25 = vld [vmem:[%s3037_s5 + $0xa0] sm:$0xff] }
 0x172   :  { %581 = vrot.lane.b32.xlu1 %v551_v26, %s2367_s28  ;;  %v2286_v26 = vpack.c.bf16 %v971_v24, %v968_v23 }
 0x173   :  { %v578_v29 = vadd.f32 %v576_v27, %v573_v19  ;;  %v579_v30 = vadd.f32 %v576_v27, %v574_v17  ;;  %v2282_v17 = vpack.c.bf16 %v965_v15, %v962_v14  ;;  %v2299_v19 = vpack.c.bf16 %v967_v18, %v964_v16  ;;  %v973_v27 = vld [vmem:[%s3037_s5 + $0xb8] sm:$0xff] }
 0x174   :  { %v2302_v28 = vpack.c.bf16 %v973_v27, %v970_v25 }
 0x175   :  { %590 = vrot.lane.b32.xlu0 %v579_v30, %s2367_s28  ;;  %v978_v30 = vld [vmem:[%s3037_s5 + $0xe0] sm:$0xff] }
 0x176   :  { %588 = vrot.lane.b32.xlu1 %v578_v29, %s2367_s28  ;;  %v975_v29 = vld [vmem:[%s3037_s5 + $0xc8] sm:$0xff] }
 0x1e4   :  { %v582_v31 = vpop.permute.xlu1 %581 }
 0x1e5   :  { %585 = vst.msk [vmem:[#allocation3 + $0x2] sm:$0xff] %vm584_vm8, %v582_v31  ;;  %v2288_v31 = vpack.c.bf16 %v978_v30, %v975_v29  ;;  %v1156_v30 = vlaneseq }
 0x1e7   :  { %v591_v32 = vpop.permute.xlu0 %590 }
 0x1e8   :  { %597 = vst.msk [vmem:[#allocation3 + $0x12] sm:$0xf] %vm596_vm9, %v591_v32  ;;  %v589_v35 = vpop.permute.xlu1 %588  ;;  %v974_v32 = vld [vmem:[%s3037_s5 + $0xc0] sm:$0xff] }
 0x1e9   :  { %595 = vst.msk [vmem:[#allocation3 + $0xa] sm:$0xf0] %vm594_vm10, %v589_v35  ;;  %v2290_v35 = vpack.c.bf16 %v977_v33, %v974_v32  ;;  %v2897_v32 = vshrl.u32 %v1156_v30, 7 }
 0x1ec   :  { %v598_v39 = vld [vmem:[#allocation3] sm:$0xff] }
 0x1ed   :  { %2037 = vmatmul.mubr.msk.f32.vlgmr.msra.gmra.mrb[12].mxu1 %vm49_vm3, %v598_v39  ;;  %2070 = vmatmul.mubr.msk.f32.vlgmr.msra.gmra.mrb[18].mxu0 %vm49_vm3, %v598_v39 }
 0x1ee   :  { %2256 = vmatpush3.bf16.msra.mxu1 %v2255_v36  ;;  %2039 = vmatprep.mubr.msk.f32.mxu1 %vm2366_vm1, %v2365_v9  ;;  %v979_v36 = vld [vmem:[%s3037_s5 + $0xe8] sm:$0xff]  ;;  %s2370_s5 = smov 64  }
 0x1ef   :  { %2072 = vmatprep.mubr.msk.f32.mxu0 %vm2366_vm1, %v2365_v9  ;;  %2257 = vmatprep.subr.bf16.mxu1 %v2364_v3  ;;  %v2305_v37 = vpack.c.bf16 %v979_v36, %v976_v34 }
 0x1f0   :  { %v599_v43 = vld [vmem:[#allocation3 + $0x8] sm:$0xff]  ;;  %v600_v47 = vld [vmem:[#allocation3 + $0x10] sm:$0xff]  ;;  %2275 = vmatpush1.bf16.msra.mxu0 %v2274_v62 }
 0x1f1   :  { %2040 = vmatmul.mubr.msk.f32.gmra.mrb[14].mxu1 %vm49_vm3, %v599_v43  ;;  %2073 = vmatmul.mubr.msk.f32.gmra.mrb[20].mxu0 %vm49_vm3, %v599_v43 }
 0x1f2   :  { %2259 = vmatpush3.bf16.msra.mxu1 %v2258_v40  ;;  %2042 = vmatprep.mubr.msk.f32.mxu1 %vm2366_vm1, %v2365_v9 }
 0x1f3   :  { %2075 = vmatprep.mubr.msk.f32.mxu0 %vm2366_vm1, %v2365_v9  ;;  %2260 = vmatprep.subr.bf16.mxu1 %v2364_v3 }
 0x1f4   :  { %2277 = vmatprep.subr.bf16.mxu0 %v2276_v4 }
 0x1f5   :  { %2043 = vmatmul.mubr.msk.f32.gmra.mrb[16].mxu1 %vm49_vm3, %v600_v47  ;;  %2076 = vmatmul.mubr.msk.f32.gmra.mrb[22].mxu0 %vm49_vm3, %v600_v47 }
 0x1f6   :  { %2262 = vmatpush3.bf16.msra.mxu1 %v2261_v44  ;;  %2102 = vmatprep.mubr.msk.f32.mxu1 %vm2366_vm1, %v2365_v9 }
 0x1f7   :  { %2263 = vmatprep.subr.bf16.mxu1 %v2364_v3  ;;  %1053 = vmatprep.mubr.f32.mxu0 %v2365_v9 }
 0x1f8   :  { %2279 = vmatpush1.bf16.msra.mxu0 %v2278_v8 }
 0x1f9   :  { %2281 = vmatprep.subr.bf16.mxu0 %v2280_v13 }
 0x1fa   :  { %2265 = vmatpush3.bf16.msra.mxu1 %v2264_v48 }
 0x1fb   :  { %2266 = vmatprep.subr.bf16.mxu1 %v2364_v3 }
 0x1fc   :  { %2283 = vmatpush1.bf16.msra.mxu0 %v2282_v17 }
 0x1fd   :  { %2285 = vmatprep.subr.bf16.mxu0 %v2284_v22 }
 0x1fe   :  { %2268 = vmatpush3.bf16.msra.mxu1 %v2267_v51 }
 0x1ff   :  { %2269 = vmatprep.subr.bf16.mxu1 %v2364_v3 }
 0x200   :  { %2287 = vmatpush1.bf16.msra.mxu0 %v2286_v26 }
 0x201   :  { %2289 = vmatprep.subr.bf16.mxu0 %v2288_v31 }
 0x202   :  { %2271 = vmatpush3.bf16.msra.mxu1 %v2270_v54 }
 0x203   :  { %2292 = vmatprep.subr.bf16.mxu1 %v2364_v3 }
 0x204   :  { %2291 = vmatpush1.bf16.msra.mxu0 %v2290_v35 }
 0x205   :  { %2103 = vmatmul.mubr.msk.f32.vlgmr.msra.gmra.mrb[18].mxu1 %vm49_vm3, %v598_v39  ;;  %2307 = vmatprep.subr.bf16.mxu0 %v2364_v3 }
 0x206   :  { %2105 = vmatprep.mubr.msk.f32.mxu1 %vm2366_vm1, %v2365_v9  ;;  %2294 = vmatpush3.bf16.msra.mxu1 %v2293_v63 }
 0x207   :  { %2295 = vmatprep.subr.bf16.mxu1 %v2364_v3 }
 0x209   :  { %2106 = vmatmul.mubr.msk.f32.gmra.mrb[20].mxu1 %vm49_vm3, %v599_v43 }
 0x20a   :  { %2108 = vmatprep.mubr.msk.f32.mxu1 %vm2366_vm1, %v2365_v9  ;;  %2297 = vmatpush3.bf16.msra.mxu1 %v2296_v10 }
 0x20b   :  { %2298 = vmatprep.subr.bf16.mxu1 %v2364_v3 }
 0x20d   :  { %2109 = vmatmul.mubr.msk.f32.gmra.mrb[22].mxu1 %vm49_vm3, %v600_v47  ;;  %vm1425_vm3 = vcmask 261120  }
 0x20e   :  { %2131 = vmatprep.mubr.msk.f32.mxu1 %vm2366_vm1, %v2365_v9  ;;  %2300 = vmatpush3.bf16.msra.mxu1 %v2299_v19 }
 0x20f   :  { %2301 = vmatprep.subr.bf16.mxu1 %v2364_v3 }
 0x212   :  { %2303 = vmatpush3.bf16.msra.mxu1 %v2302_v28  ;;  %v2368_v28 = vmov 1966171168  }
 0x213   :  { %2304 = vmatprep.subr.bf16.mxu1 %v2364_v3  ;;  %v1154_v29 = vunpack.c.l.s4 %v2368_v28 }
 0x215   :  { %v1155_v31 = vunpack.c.0.s8 %v1154_v29 }
 0x216   :  { %2306 = vmatpush3.bf16.msra.mxu1 %v2305_v37 }
 0x217   :  { %2319 = vmatprep.subr.bf16.mxu1 %v2364_v3  ;;  %v2900_v33 = vsub.s32 %v1155_v31, %v2897_v32  ;;  %v1150_v31 = vld [vmem:[%s3038_s6] sm:$0x1] }
 0x2c0   :  { %v688_v38 = vpop.f32.mrb[12].mxu1  ;;  %v781_v39 = vpop.f32.mrb[18].mxu0 }
 0x2c1   :  { %v2038_v40 = vpop.f32.mrb[13].mxu1  ;;  %v2071_v41 = vpop.f32.mrb[19].mxu0  ;;  %v899_v45 = vrot.slane %v781_v39, 1  ;;  %v895_v50 = vadd.f32 %v1776_v42, %v688_v38 }
 0x2c4   :  { %v693_v43 = vpop.f32.mrb[14].mxu1  ;;  %v786_v44 = vpop.f32.mrb[20].mxu0 }
 0x2c5   :  { %v896_v46 = vadd.f32 %v1776_v42, %v693_v43  ;;  %v900_v47 = vrot.slane %v786_v44, 1  ;;  %v2041_v48 = vpop.f32.mrb[15].mxu1  ;;  %v2074_v49 = vpop.f32.mrb[21].mxu0 }
 0x2c7   :  { %v901_v51 = vsel %vm522_vm4, %v899_v45, %v900_v47  ;;  %v905_v52 = vadd.f32 %v900_v47, %v896_v46 }
 0x2c8   :  { %v904_v53 = vadd.f32 %v901_v51, %v895_v50  ;;  %v698_v54 = vpop.f32.mrb[16].mxu1  ;;  %v791_v55 = vpop.f32.mrb[22].mxu0 }
 0x2c9   :  { %v921_v56 = vadd.f32 %v1776_v42, %v698_v54  ;;  %v923_v57 = vrot.slane %v791_v55, 1  ;;  %v2044_v58 = vpop.f32.mrb[17].mxu1  ;;  %v2077_v59 = vpop.f32.mrb[23].mxu0 }
 0x2cb   :  { %v924_v60 = vsel %vm522_vm4, %v900_v47, %v923_v57  ;;  %v928_v61 = vadd.f32 %v923_v57, %v921_v56 }
 0x2cc   :  { %v927_v62 = vadd.f32 %v924_v60, %v896_v46 }
 0x2d8   :  { %v874_v63 = vpop.f32.mrb[18].mxu1 }
 0x2d9   :  { %v2104_v0 = vpop.f32.mrb[19].mxu1  ;;  %v908_v2 = vrot.slane %v874_v63, 2 }
 0x2dc   :  { %v879_v1 = vpop.f32.mrb[20].mxu1 }
 0x2dd   :  { %v909_v4 = vrot.slane %v879_v1, 2  ;;  %v2107_v5 = vpop.f32.mrb[21].mxu1 }
 0x2df   :  { %v910_v6 = vsel %vm530_vm5, %v908_v2, %v909_v4  ;;  %v914_v7 = vadd.f32 %v909_v4, %v905_v52 }
 0x2e0   :  { %v913_v8 = vadd.f32 %v910_v6, %v904_v53  ;;  %v884_v10 = vpop.f32.mrb[22].mxu1 }
 0x2e1   :  { %v930_v11 = vrot.slane %v884_v10, 2  ;;  %v2110_v12 = vpop.f32.mrb[23].mxu1  ;;  %v918_v20 = vmul.f32 0.01, %v914_v7  ;;  %vm916_vm15 = vcmp.ge.f32.partialorder %v914_v7, 0.0  ;;  %v1415_v10 = vld [vmem:[%s3039_s7 + $0x8] sm:$0xff] }
 0x2e2   :  { %vm915_vm11 = vcmp.ge.f32.partialorder %v913_v8, 0.0  ;;  %v917_v13 = vmul.f32 0.01, %v913_v8 }
 0x2e3   :  { %v931_v14 = vsel %vm530_vm5, %v909_v4, %v930_v11  ;;  %v935_v15 = vadd.f32 %v930_v11, %v928_v61  ;;  %v920_v25 = vsel %vm916_vm15, %v914_v7, %v918_v20 }
 0x2e4   :  { %v934_v16 = vadd.f32 %v931_v14, %v927_v62  ;;  %v919_v17 = vsel %vm915_vm11, %v913_v8, %v917_v13  ;;  %v1414_v8 = vld [vmem:[%s3039_s7] sm:$0xff] }
 0x2e5   :  { %vm937_vm13 = vcmp.ge.f32.partialorder %v935_v15, 0.0  ;;  %v939_v18 = vmul.f32 0.01, %v935_v15  ;;  %1777 = vmatmul.mubr.msk.f32.vlgmr.msra.gmra.mrb[24].mxu0 %vm980_vm12, %v919_v17  ;;  %2132 = vmatmul.mubr.msk.f32.vlgmr.msra.gmra.mrb[24].mxu1 %vm980_vm12, %v919_v17  ;;  %v2308_v11 = vpack.c.bf16 %v1415_v10, %v1414_v8  ;;  %v1416_v17 = vld [vmem:[%s3039_s7 + $0x10] sm:$0xff]  ;;  %v1502_v8 = vld [vmem:[%s3041_s9] sm:$0xff] }
 0x2e6   :  { %vm936_vm14 = vcmp.ge.f32.partialorder %v934_v16, 0.0  ;;  %v938_v19 = vmul.f32 0.01, %v934_v16  ;;  %1059 = vmatprep.mubr.f32.mxu0 %v2365_v9  ;;  %2134 = vmatprep.mubr.msk.f32.mxu1 %vm2366_vm1, %v2365_v9 }
 0x2e7   :  { %v941_v21 = vsel %vm937_vm13, %v935_v15, %v939_v18  ;;  %2309 = vmatpush3.bf16.msra.mxu0 %v2308_v11  ;;  %v1417_v18 = vld [vmem:[%s3039_s7 + $0x18] sm:$0xff] }
 0x2e8   :  { %v945_v22 = vrot.slane %v941_v21, 2  ;;  %v940_v23 = vsel %vm936_vm14, %v934_v16, %v938_v19  ;;  %2310 = vmatprep.subr.bf16.mxu0 %v2364_v3  ;;  %v2311_v19 = vpack.c.bf16 %v1417_v18, %v1416_v17  ;;  %v1783_v18 = vld [vmem:[%s3040_s8] ss:$0 sm:$0xff] }
 0x2e9   :  { %v944_v24 = vrot.slane %v940_v23, 2 }
 0x2eb   :  { %v946_v26 = vsel %vm530_vm5, %v944_v24, %v945_v22  ;;  %2312 = vmatpush3.bf16.msra.mxu0 %v2311_v19  ;;  %vm1673_vm5 = vcmask 41984  }
 0x2ec   :  { %v949_v27 = vsel %vm948_vm0, %v920_v25, %v946_v26  ;;  %2313 = vmatprep.subr.bf16.mxu0 %v2364_v3 }
 0x2ed   :  { %1778 = vmatmul.mubr.msk.f32.gmra.mrb[26].mxu0 %vm980_vm12, %v949_v27  ;;  %2135 = vmatmul.mubr.msk.f32.gmra.mrb[26].mxu1 %vm980_vm12, %v949_v27 }
 0x2ee   :  { %1065 = vmatprep.mubr.f32.mxu0 %v2365_v9  ;;  %2137 = vmatprep.mubr.msk.f32.mxu1 %vm2366_vm1, %v2365_v9 }
 0x2f1   :  { %1779 = vmatmul.mubr.msk.f32.gmra.mrb[28].mxu0 %vm980_vm12, %v945_v22  ;;  %2138 = vmatmul.mubr.msk.f32.gmra.mrb[28].mxu1 %vm980_vm12, %v945_v22 }
 0x2f2   :  { %2148 = vmatprep.mubr.msk.f32.mxu0 %vm2366_vm1, %v2365_v9  ;;  %2170 = vmatprep.mubr.msk.f32.mxu1 %vm2366_vm1, %v2365_v9 }
 0x3b8   :  { %v2902_v34 = vpop.f32.mrb[24].mxu0  ;;  %v1137_v35 = vpop.f32.mrb[24].mxu1 }
 0x3b9   :  { %v1159_v36 = vrot.slane %v2902_v34, %v2900_v33  ;;  %v1057_v37 = vpop.f32.mrb[25].mxu0  ;;  %v2133_v38 = vpop.f32.mrb[25].mxu1 }
 0x3ba   :  { %v1190_v41 = vcombine.high %v1057_v37, %v1057_v37 }
 0x3bb   :  { %v1160_v39 = vcombine.high %v1159_v36, %v1159_v36  ;;  %v1167_v40 = vrot.slane %v1159_v36, %v2900_v33  ;;  %v1151_v36 = vadd.f32 %v1150_v31, %v2902_v34 }
 0x3bc   :  { %v1197_v45 = vrot.slane %v1190_v41, %v2900_v33 }
 0x3bd   :  { %v1174_v42 = vrot.slane %v1160_v39, %v2900_v33  ;;  %v1179_v50 = vcombine.high %v1167_v40, %v1167_v40 }
 0x3be   :  { %v1207_v58 = vcombine.high %v1197_v45, %v1197_v45  ;;  %v1204_v4 = vrot.slane %v1197_v45, %v2900_v33 }
 0x3bf   :  { %1175 = vrot.lane.b32.xlu0 %v1174_v42, %s2369_s4  ;;  %v1184_v62 = vcombine.high %v1174_v42, %v1174_v42 }
 0x3c0   :  { %v1061_v43 = vpop.f32.mrb[26].mxu0  ;;  %v2909_v44 = vpop.f32.mrb[26].mxu1  ;;  %v1214_v6 = vrot.slane %v1207_v58, %v2900_v33  ;;  %v1219_v12 = vcombine.high %v1204_v4, %v1204_v4 }
 0x3c1   :  { %v1257_v46 = vrot.slane %v1061_v43, %v2900_v33  ;;  %v1281_v47 = vcombine.high %v1061_v43, %v1061_v43  ;;  %v1063_v48 = vpop.f32.mrb[27].mxu0  ;;  %v2136_v49 = vpop.f32.mrb[27].mxu1  ;;  %v1237_v13 = vrot.slane %v2909_v44, %v2900_v33 }
 0x3c2   :  { %v1313_v51 = vcombine.high %v1063_v48, %v1063_v48  ;;  %v1224_v22 = vcombine.high %v1214_v6, %v1214_v6 }
 0x3c3   :  { %v2914_v52 = vrot.slane %v1257_v46, %v2900_v33  ;;  %v1268_v53 = vcombine.high %v1257_v46, %v1257_v46  ;;  %v1288_v54 = vrot.slane %v1281_v47, %v2900_v33  ;;  %1180 = vrot.lane.b32.xlu0 %v1179_v50, %s2370_s5  ;;  %v1238_v20 = vcombine.high %v1237_v13, %v1237_v13 }
 0x3c4   :  { %v1320_v55 = vrot.slane %v1313_v51, %v2900_v33  ;;  %v1067_v56 = vpop.f32.mrb[28].mxu0  ;;  %v1146_v57 = vpop.f32.mrb[28].mxu1 }
 0x3c5   :  { %v1382_v59 = vrot.slane %v1146_v57, %v2900_v33  ;;  %v1068_v60 = vpop.f32.mrb[29].mxu0  ;;  %v2139_v61 = vpop.f32.mrb[29].mxu1  ;;  %v1295_v63 = vrot.slane %v1288_v54, %v2900_v33  ;;  %v1275_v1 = vrot.slane %v1268_v53, %v2900_v33  ;;  %v1300_v5 = vcombine.high %v1288_v54, %v1288_v54 }
 0x3c6   :  { %v2922_v0 = vrot.slane %v1320_v55, %v2900_v33  ;;  %v1331_v14 = vcombine.high %v1320_v55, %v1320_v55  ;;  %v1351_v15 = vrot.slane %v1068_v60, %v2900_v33  ;;  %v1245_v26 = vrot.slane %v1238_v20, %v2900_v33 }
 0x3c7   :  { %v2926_v2 = vrot.slane %v1382_v59, %v2900_v33  ;;  %1185 = vrot.lane.b32.xlu0 %v1184_v62, %s2371_s2  ;;  %1296 = vrot.lane.b32.xlu1 %v1295_v63, %s2370_s5  ;;  %v1276_v7 = vcombine.high %v1275_v1, %v1275_v1  ;;  %v1307_v16 = vrot.slane %v1300_v5, %v2900_v33 }
 0x3c8   :  { %v1358_v21 = vrot.slane %v1351_v15, %v2900_v33  ;;  %v1338_v23 = vrot.slane %v1331_v14, %v2900_v33  ;;  %v1393_v24 = vcombine.high %v1382_v59, %v1382_v59  ;;  %v1363_v25 = vcombine.high %v1351_v15, %v1351_v15  ;;  %v1505_v14 = vld [vmem:[%s3041_s9 + $0x18] sm:$0xff] }
 0x3c9   :  { %v1265_v39 = vcombine.high %v2914_v52, %v2914_v52  ;;  %v1328_v34 = vcombine.high %v2922_v0, %v2922_v0  ;;  %v1390_v1 = vcombine.high %v2926_v2, %v2926_v2 }
 0x3ca   :  { %v1339_v27 = vcombine.high %v1338_v23, %v1338_v23  ;;  %v1370_v28 = vrot.slane %v1363_v25, %v2900_v33  ;;  %v1400_v29 = vrot.slane %v1393_v24, %v2900_v33  ;;  %v1591_v24 = vld [vmem:[%s3043_s11 + $0x10] sm:$0xff] }
 0x3cb   :  { %1215 = vrot.lane.b32.xlu0 %v1214_v6, %s2369_s4  ;;  %1277 = vrot.lane.b32.xlu1 %v1276_v7, %s2369_s4  ;;  %v1267_v43 = vadd.f32 %v1265_v39, %v1150_v31  ;;  %v1409_v6 = vsub.s32 0, %v2897_v32  ;;  %v1504_v32 = vld [vmem:[%s3041_s9 + $0x10] sm:$0xff] }
 0x3cc   :  { %v1401_v30 = vcombine.high %v1400_v29, %v1400_v29  ;;  %v2317_v15 = vpack.c.bf16 %v1505_v14, %v1504_v32 }
 0x3cf   :  { %1220 = vrot.lane.b32.xlu0 %v1219_v12, %s2370_s5  ;;  %1308 = vrot.lane.b32.xlu1 %v1307_v16, %s2371_s2  ;;  %v1589_v16 = vld [vmem:[%s3043_s11] sm:$0xff] }
 0x3d3   :  { %1225 = vrot.lane.b32.xlu0 %v1224_v22, %s2371_s2  ;;  %1359 = vrot.lane.b32.xlu1 %v1358_v21, %s2370_s5 }
 0x3d7   :  { %1246 = vrot.lane.b32.xlu0 %v1245_v26, %s2369_s4  ;;  %1340 = vrot.lane.b32.xlu1 %v1339_v27, %s2369_s4  ;;  %v1785_v26 = vld [vmem:[%s3042_s10] ss:$0 sm:$0xff]  ;;  %s2372_s10 = smov [#allocation4]  }
 0x3db   :  { %1371 = vrot.lane.b32.xlu1 %v1370_v28, %s2371_s2 }
 0x3df   :  { %1402 = vrot.lane.b32.xlu1 %v1401_v30, %s2369_s4 }
 0x431   :  { %v1176_v35 = vpop.permute.xlu0 %1175 }
 0x432   :  { %v1178_v38 = vadd.f32 %v1176_v35, %v1151_v36  ;;  %v1787_v35 = vld [vmem:[%s3044_s12] ss:$0 sm:$0xff] }
 0x435   :  { %v1181_v37 = vpop.permute.xlu0 %1180 }
 0x436   :  { %v1183_v40 = vadd.f32 %v1181_v37, %v1178_v38 }
 0x439   :  { %v1186_v41 = vpop.permute.xlu0 %1185  ;;  %v1297_v33 = vpop.permute.xlu1 %1296 }
 0x43a   :  { %v1188_v42 = vadd.f32 %v1186_v41, %v1183_v40 }
 0x43c   :  { %v1206_v47 = vadd.f32 %v1204_v4, %v1188_v42 }
 0x43d   :  { %v1216_v45 = vpop.permute.xlu0 %1215  ;;  %v1278_v46 = vpop.permute.xlu1 %1277 }
 0x43e   :  { %v1280_v48 = vadd.f32 %v1278_v46, %v1267_v43  ;;  %v1218_v53 = vadd.f32 %v1216_v45, %v1206_v47 }
 0x440   :  { %v1299_v49 = vadd.f32 %v1297_v33, %v1280_v48 }
 0x441   :  { %v1221_v50 = vpop.permute.xlu0 %1220  ;;  %v1309_v51 = vpop.permute.xlu1 %1308 }
 0x442   :  { %v1311_v54 = vadd.f32 %v1309_v51, %v1299_v49  ;;  %v1223_v55 = vadd.f32 %v1221_v50, %v1218_v53 }
 0x444   :  { %v1330_v56 = vadd.f32 %v1328_v34, %v1311_v54 }
 0x445   :  { %v1226_v52 = vpop.permute.xlu0 %1225  ;;  %v1360_v57 = vpop.permute.xlu1 %1359 }
 0x446   :  { %v1228_v58 = vadd.f32 %v1226_v52, %v1223_v55 }
 0x448   :  { %v1229_v59 = vadd.f32 %v1228_v58, %v2909_v44  ;;  %v1503_v44 = vld [vmem:[%s3041_s9 + $0x8] sm:$0xff] }
 0x449   :  { %v1341_v60 = vpop.permute.xlu1 %1340  ;;  %v1247_v7 = vpop.permute.xlu0 %1246  ;;  %v2314_v2 = vpack.c.bf16 %v1503_v44, %v1502_v8 }
 0x44a   :  { %v1343_v61 = vadd.f32 %v1341_v60, %v1330_v56  ;;  %v1249_v11 = vadd.f32 %v1247_v7, %v1229_v59 }
 0x44c   :  { %v1362_v62 = vadd.f32 %v1360_v57, %v1343_v61 }
 0x44d   :  { %v1372_v63 = vpop.permute.xlu1 %1371 }
 0x44e   :  { %v1374_v4 = vadd.f32 %v1372_v63, %v1362_v62 }
 0x450   :  { %v1392_v5 = vadd.f32 %v1390_v1, %v1374_v4 }
 0x451   :  { %v1403_v0 = vpop.permute.xlu1 %1402 }
 0x452   :  { %v1405_v10 = vadd.f32 %v1403_v0, %v1392_v5 }
 0x454   :  { %v1410_v12 = vrot.slane %v1405_v10, %v1409_v6 }
 0x456   :  { %v1413_v13 = vsel %vm1412_vm2, %v1249_v11, %v1410_v12 }
 0x457   :  { %2149 = vmatmul.mubr.msk.f32.vlgmr.msra.gmra.mrb[30].mxu0 %vm1425_vm3, %v1413_v13 }
 0x458   :  { %2315 = vmatpush3.bf16.msra.mxu0 %v2314_v2  ;;  %2159 = vmatprep.mubr.msk.f32.mxu0 %vm2366_vm1, %v2365_v9  ;;  %v1590_v9 = vld [vmem:[%s3043_s11 + $0x8] sm:$0xff] }
 0x459   :  { %2316 = vmatprep.subr.bf16.mxu0 %v2364_v3  ;;  %v2320_v17 = vpack.c.bf16 %v1590_v9, %v1589_v16 }
 0x45b   :  { %2321 = vmatpush3.bf16.msra.mxu1 %v2320_v17 }
 0x45c   :  { %2318 = vmatpush3.bf16.msra.mxu0 %v2317_v15  ;;  %2322 = vmatprep.subr.bf16.mxu1 %v2364_v3  ;;  %v1592_v3 = vld [vmem:[%s3043_s11 + $0x18] sm:$0xff]  ;;  %s1695_s11 = sshll.u32 %s2372_s10, 4  ;;  %s1696_s11 = int_to_ptr.vmem [resolvable:$true] %s1695_s11 }
 0x45d   :  { %v2323_v25 = vpack.c.bf16 %v1592_v3, %v1591_v24  ;;  %s2339_s12 = scalar_lea.vmem %s1696_s11, 32  ;;  %p2344_p1 = scmp.lt.s32.totalorder %s1696_s11, %s1696_s11 }
 0x45e   :  { %p2340_p0 = scmp.ne.s32.totalorder %s1696_s11, %s2339_s12  ;;  %p2345_p2 = scmp.lt.s32.totalorder %s2339_s12, %s2339_s12 }
 0x45f   :  { %2324 = vmatpush3.bf16.msra.mxu1 %v2323_v25 }
 0x460   :  { %p2346_p3 = por %p2345_p2, %p2344_p1 }
 0x462   :  { %p2347_p4 = pnand %p2346_p3, %p2340_p0 }
 0x52a   :  { %v1495_v19 = vpop.f32.mrb[30].mxu0 }
 0x52b   :  { %v1496_v20 = vadd.f32 %v1783_v18, %v1495_v19  ;;  %v2150_v21 = vpop.f32.mrb[31].mxu0 }
 0x52d   :  { %vm1499_vm1 = vcmp.ge.f32.partialorder %v1496_v20, 0.0  ;;  %v1500_v22 = vmul.f32 0.01, %v1496_v20 }
 0x52f   :  { %v1501_v23 = vsel %vm1499_vm1, %v1496_v20, %v1500_v22 }
 0x530   :  { %2160 = vmatmul.mubr.msk.f32.vlgmr.msra.gmra.mrb[32].mxu0 %vm1425_vm3, %v1501_v23 }
 0x603   :  { %v1582_v27 = vpop.f32.mrb[32].mxu0 }
 0x604   :  { %v1583_v28 = vadd.f32 %v1785_v26, %v1582_v27  ;;  %v2161_v29 = vpop.f32.mrb[33].mxu0 }
 0x606   :  { %vm1586_vm4 = vcmp.ge.f32.partialorder %v1583_v28, 0.0  ;;  %v1587_v30 = vmul.f32 0.01, %v1583_v28 }
 0x608   :  { %v1588_v31 = vsel %vm1586_vm4, %v1583_v28, %v1587_v30 }
 0x609   :  { %2171 = vmatmul.mubr.msk.f32.vlgmr.msra.gmra.mrb[30].mxu1 %vm1425_vm3, %v1588_v31 }
 0x6dc   :  { %v1669_v36 = vpop.f32.mrb[30].mxu1 }
 0x6dd   :  { %v1670_v37 = vadd.f32 %v1787_v35, %v1669_v36  ;;  %v2172_v38 = vpop.f32.mrb[31].mxu1 }
 0x6df   :  { %v1674_v39 = vsel %vm1673_vm5, %v1670_v37, -inf }
 0x6e0   :  { %1675 = vmax.xlane.f32.xlu1 %v1674_v39 }
 0x76d   :  { %v1676_v40 = vpop.xlane.xlu1 %1675 }
 0x76e   :  { %v1677_v41 = vsub.f32 %v1670_v37, %v1676_v40 }
 0x770   :  { %v1678_v33 = vmul.f32 1.442695, %v1677_v41 }
 0x772   :  { %2335 = vpow2.f32 %v1678_v33 }
 0x77c   :  { %v2336_v42 = vpop.eup %2335 }
 0x77d   :  { %v1680_v43 = vsel %vm1673_vm5, %v2336_v42, 0.0 }
 0x77e   :  { %1681 = vadd.xlane.f32.xlu0 %v1680_v43 }
 0x80b   :  { %v1682_v45 = vpop.xlane.xlu0 %1681 }
 0x80c   :  { %2337 = vrcp.f32 %v1682_v45 }
 0x816   :  { %v2338_v46 = vpop.eup %2337 }
 0x817   :  { %v1684_v47 = vmul.f32 %v2338_v46, %v1682_v45 }
 0x819   :  { %v1685_v48 = vsub.f32 2.0, %v1684_v47 }
 0x81b   :  { %v1686_v49 = vmul.f32 %v2338_v46, %v1685_v48 }
 0x81d   :  { %v1687_v50 = vmul.f32 %v2336_v42, %v1686_v49 }
 0x81f   :  { %1688 = vst.msk [vmem:[#allocation4] sm:$0x3] %vm1673_vm5, %v1687_v50 }
 0x820   :  { %2350 = shalt.err (!%p2347_p4)
}
 0x821   :  { %s2351_s20 = scalar_lea.hbm %s3045_s13, 32 }
 0x822   :  { %p2352_p5 = scmp.ne.s32.totalorder %s3045_s13, %s2351_s20  ;;  %p2355_p6 = scmp.lt.u32.totalorder %s2351_s20, %s3045_s13 }
 0x824   :  { %p2357_p7 = pnand %p2355_p6, %p2352_p5 }
 0x826   :  { %2360 = shalt.err (!%p2357_p7)
}
 0x827   :  { %1698 = dma.vmem_to_hbm [thread:$0]  %s1696_s11, 32, %s3045_s13, [#allocation5]  }
 0x828   :  { %2361 = dma.done.wait [#allocation5], 32  }
 0x829   :  { %2362 = vsyncadd [#allocation5], 4294967264 }
 0x82a   :  { %1702 = vsyncpa [#allocation5], 1 }

</bundles_post_ra>
